<compile_context>
chip_gen: v5e
topology: v5e:2x2
jax: 0.10.0
libtpu: 0.0.40
codegen_flags: <defaults>
</compile_context>

<pallas_src>
import math
import functools

import numpy as np
import jax
import jax.numpy as jnp
from jax.experimental import pallas as pl
from jax.experimental.pallas import tpu as pltpu


def _round_up(v, m):
    return ((v + m - 1) // m) * m


def _round_down(v, m):
    return (v // m) * m


def _vmem_budget_bytes():
    """Generation-aware VMEM budget for tile planning (and vmem_limit_bytes)."""
    try:
        cap = int(pltpu.get_tpu_info().vmem_capacity_bytes)
    except Exception:
        cap = 64 << 20  # conservative fallback: assume the smallest (v7x-class) VMEM
    if cap <= (64 << 20):
        return 48 << 20   # v7x: 64 MiB per TensorCore, leave headroom
    return 100 << 20      # v5e/v6e: 128 MiB physical


def _choose_pack(dims, max_pack=8):
    """Smallest P so every *input/hidden* width becomes a multiple of 128 lanes.

    The output width is intentionally NOT folded in (it would inflate MXU MACs
    for all hidden layers just to make the last, tiny store lane-dense)."""
    P = 1
    for d in dims[:-1]:
        need = 128 // math.gcd(int(d), 128)
        P = P * need // math.gcd(P, need)  # lcm
    if P > max_pack:
        # TODO(synk): very odd feature widths -> fall back to unpacked layout
        # (masked partial-lane loads/stores, still correct).
        return 1
    return P


def prepare_mlp_params(weights, biases, *, compute_dtype=jnp.bfloat16,
                       pack="auto", max_pack=8):
    """One-time packing of the MLP parameters (do NOT call per forward pass).

    weights: list of (in_l, out_l) arrays (transposed vs. PyTorch's (out, in))
    biases:  list of (1, out_l) or (out_l,) arrays
    """
    num_layers = len(weights)
    assert num_layers >= 1 and len(biases) == num_layers
    dims = [int(weights[0].shape[0])] + [int(w.shape[1]) for w in weights]

    P = _choose_pack(dims, max_pack) if pack == "auto" else max(1, int(pack))

    packed = []
    for w, b in zip(weights, biases):
        b = jnp.reshape(b, (1, -1))
        if P > 1:
            w = jnp.kron(jnp.eye(P, dtype=w.dtype), w)   # block-diagonal weight
            b = jnp.tile(b, (1, P))
        packed.append(w.astype(compute_dtype))
        packed.append(b.astype(jnp.float32))

    return {
        "P": P,
        "dims": dims,
        "num_layers": num_layers,
        "compute_dtype": compute_dtype,
        "packed": tuple(packed),
    }


def _mlp_kernel(num_layers, compute_dtype, *refs):
    """refs = (x_ref, w0, b0, w1, b1, ..., w_{L-1}, b_{L-1}, out_ref)."""
    x_ref = refs[0]
    out_ref = refs[-1]
    params = refs[1:-1]

    # Cast the streamed (possibly f32) input to the MXU compute dtype in-kernel.
    h = x_ref[...].astype(compute_dtype)
    for l in range(num_layers):
        w_ref = params[2 * l]
        b_ref = params[2 * l + 1]
        h32 = jnp.dot(h, w_ref[...], preferred_element_type=jnp.float32)
        h32 = h32 + b_ref[...]                       # f32 bias, broadcast over rows
        if l != num_layers - 1:
            # ReLU, then immediately back to bf16: halves the live intermediate.
            h = jnp.maximum(h32, 0.0).astype(compute_dtype)
        else:
            out_ref[...] = h32.astype(out_ref.dtype)


def mlp_pallas(x, params, *, block_batch=65536, out_dtype=None,
               vmem_limit_bytes=None):
    """MLP forward (Linear + ReLU stack) as one Pallas TPU kernel.

    x:      (N, dim_in)
    params: output of prepare_mlp_params(weights, biases)
    """
    P = params["P"]
    dims = params["dims"]
    num_layers = params["num_layers"]
    compute_dtype = params["compute_dtype"]
    packed = params["packed"]

    N, dim_in = x.shape
    assert dim_in == dims[0], "x feature width does not match the prepared params"
    dim_out = dims[-1]
    if out_dtype is None:
        out_dtype = x.dtype

    # ---- pad only to a multiple of P (usually a no-op); the ragged last grid
    # block is handled by Pallas (writes clipped, garbage rows discarded).
    n_pad = _round_up(N, P)
    xp = x if n_pad == N else jnp.pad(x, ((0, n_pad - N), (0, 0)))
    n_rows = n_pad // P
    xp = xp.reshape(n_rows, P * dim_in)   # free row-major reshape, dtype untouched

    dims_p = [P * d for d in dims]
    din_p, dout_p = dims_p[0], dims_p[-1]

    # ---- VMEM-budget-driven tile planning (packed rows per grid step).
    budget = _vmem_budget_bytes() if vmem_limit_bytes is None else int(vmem_limit_bytes)
    x_bytes = np.dtype(xp.dtype).itemsize
    o_bytes = np.dtype(out_dtype).itemsize
    c_bytes = np.dtype(compute_dtype).itemsize
    param_bytes = sum(int(p.size) * p.dtype.itemsize for p in packed)

    per_row = (2 * din_p * x_bytes                       # double-buffered x tile
               + 2 * dout_p * o_bytes                    # double-buffered out tile
               + 2 * (max(dims_p[1:]) * 4                # live f32 dot result(s)
                      + max(dims_p[:-1]) * c_bytes))     # live bf16 activation(s)
    resident = 2 * param_bytes + (4 << 20)               # 2x params + compiler scratch
    bm_budget = max(8, _round_down((budget - resident) // per_row, 8))
    bm_request = max(8, _round_down(max(int(block_batch), P) // P, 8))
    bm = min(bm_budget, bm_request)

    if bm >= n_rows:
        bm = n_rows          # one maximal tile (block dim == full dim is legal)
        num_blocks = 1
    else:
        num_blocks = pl.cdiv(n_rows, bm)
        if num_blocks % 2 == 1:          # v7x megacore: even, balanced blocks
            num_blocks += 1
        bm = min(bm, _round_up(pl.cdiv(n_rows, num_blocks), 8))
        num_blocks = pl.cdiv(n_rows, bm)

    # ---- block specs: batch streamed, params fully resident.
    in_specs = [pl.BlockSpec((bm, din_p), lambda i: (i, 0))]
    for p in packed:
        in_specs.append(pl.BlockSpec(p.shape, lambda i: (0, 0)))
    out_specs = pl.BlockSpec((bm, dout_p), lambda i: (i, 0))

    kernel = functools.partial(_mlp_kernel, num_layers, compute_dtype)

    out_packed = pl.pallas_call(
        kernel,
        out_shape=jax.ShapeDtypeStruct((n_rows, dout_p), out_dtype),
        grid_spec=pltpu.PrefetchScalarGridSpec(
            num_scalar_prefetch=0,
            grid=(num_blocks,),
            in_specs=in_specs,
            out_specs=out_specs,
        ),
        compiler_params=pltpu.CompilerParams(
            dimension_semantics=("parallel",),
            vmem_limit_bytes=int(budget),
        ),
    )(xp, *packed)

    out = out_packed.reshape(n_pad, dim_out)
    return out[:N] if n_pad != N else out


def mlp_forward(x, weights, biases, **kwargs):
    """Convenience: prepare params and run (prefer prepare_mlp_params once)."""
    prep_kw = {k: kwargs.pop(k) for k in ("compute_dtype", "pack", "max_pack")
               if k in kwargs}
    return mlp_pallas(x, prepare_mlp_params(weights, biases, **prep_kw), **kwargs)


def init_mlp_params(key, dim_in, dim_out, dim_hidden, num_layers, bias=True):
    """Init matching the PyTorch module's shapes (kaiming_uniform_ weights)."""
    weights, biases = [], []
    for l in range(num_layers):
        d_in = dim_in if l == 0 else dim_hidden
        d_out = dim_out if l == num_layers - 1 else dim_hidden
        key, kw, kb = jax.random.split(key, 3)
        w_bound = math.sqrt(6.0 / d_in)
        # stored as (in, out) = transpose of PyTorch's (out, in)
        w = jax.random.uniform(kw, (d_in, d_out), jnp.float32,
                               minval=-w_bound, maxval=w_bound)
        if bias:
            b_bound = 1.0 / math.sqrt(d_in)
            b = jax.random.uniform(kb, (1, d_out), jnp.float32,
                                   minval=-b_bound, maxval=b_bound)
        else:
            b = jnp.zeros((1, d_out), jnp.float32)
        weights.append(w)
        biases.append(b)
    return weights, biases


def mlp_reference(x, weights, biases, compute_dtype=None):
    """Pure-JAX reference. If compute_dtype is set, mimics the kernel's matmul
    precision (cast operands, accumulate in f32)."""
    h = x
    L = len(weights)
    for l in range(L):
        w = weights[l]
        if compute_dtype is not None:
            h = h.astype(compute_dtype)
            w = w.astype(compute_dtype)
        h = jnp.dot(h, w, preferred_element_type=jnp.float32)
        h = h + jnp.reshape(biases[l], (1, -1)).astype(jnp.float32)
        if l != L - 1:
            h = jnp.maximum(h, 0.0)
    return h


if __name__ == "__main__":
    # Shapes consistent with the module: MLP(dim_in=32, dim_out=16, dim_hidden=64,
    # num_layers=3).  Small N keeps the test quick.
    dim_in, dim_out, dim_hidden, num_layers = 32, 16, 64, 3
    N = 1000

    key = jax.random.PRNGKey(0)
    key, kx = jax.random.split(key)
    x = jax.random.normal(kx, (N, dim_in), jnp.float32)
    weights, biases = init_mlp_params(key, dim_in, dim_out, dim_hidden,
                                      num_layers, bias=True)

    # Prepare packed params once (outside the per-call path).
    params = prepare_mlp_params(weights, biases)

    # 1) Default path: one maximal tile (single grid step at this small N).
    out = jax.block_until_ready(mlp_pallas(x, params))
    assert out.shape == (N, dim_out)

    ref_bf16 = mlp_reference(x, weights, biases, compute_dtype=jnp.bfloat16)
    if not jnp.allclose(out, ref_bf16, atol=5e-3, rtol=5e-3):
        raise AssertionError("Pallas MLP output mismatch vs bf16-precision reference")

    ref_f32 = mlp_reference(x, weights, biases)
    max_err = float(jnp.max(jnp.abs(out - ref_f32)))
    if max_err > 0.25:
        raise AssertionError(
            f"bf16 kernel drifted too far from f32 reference: max abs err {max_err}")

    # 2) Multi-block + ragged-last-block + N not a multiple of P.
    N2 = 997
    x2 = x[:N2]
    out2 = jax.block_until_ready(mlp_pallas(x2, params, block_batch=512))
    assert out2.shape == (N2, dim_out)
    ref2 = mlp_reference(x2, weights, biases, compute_dtype=jnp.bfloat16)
    if not jnp.allclose(out2, ref2, atol=5e-3, rtol=5e-3):
        raise AssertionError("Pallas MLP (tiled/ragged path) mismatch vs reference")

    print("KERNEL_OK")
</pallas_src>

<mosaic_0001>
module attributes {stable_mosaic.version = 11 : i64} {
  func.func @_mlp_kernel(%arg0: i32, %arg1: memref<250x128xf32, #tpu.memory_space<vmem>>, %arg2: memref<128x256xbf16, #tpu.memory_space<vmem>>, %arg3: memref<1x256xf32, #tpu.memory_space<vmem>>, %arg4: memref<256x256xbf16, #tpu.memory_space<vmem>>, %arg5: memref<1x256xf32, #tpu.memory_space<vmem>>, %arg6: memref<256x64xbf16, #tpu.memory_space<vmem>>, %arg7: memref<1x64xf32, #tpu.memory_space<vmem>>, %arg8: memref<250x64xf32, #tpu.memory_space<vmem>>) attributes {dimension_semantics = [#tpu.dimension_semantics<parallel>], iteration_bounds = array<i64: 1>, scalar_prefetch = 0 : i64, scratch_operands = 0 : i64, tpu.core_type = #tpu.core_type<tc>, window_params = [{transform_indices = @transform_0, window_bounds = array<i64: 250, 128>}, {pipeline_mode = #tpu.pipeline_mode<synchronous>, transform_indices = @transform_1, window_bounds = array<i64: 128, 256>}, {pipeline_mode = #tpu.pipeline_mode<synchronous>, transform_indices = @transform_2, window_bounds = array<i64: 1, 256>}, {pipeline_mode = #tpu.pipeline_mode<synchronous>, transform_indices = @transform_3, window_bounds = array<i64: 256, 256>}, {pipeline_mode = #tpu.pipeline_mode<synchronous>, transform_indices = @transform_4, window_bounds = array<i64: 1, 256>}, {pipeline_mode = #tpu.pipeline_mode<synchronous>, transform_indices = @transform_5, window_bounds = array<i64: 256, 64>}, {pipeline_mode = #tpu.pipeline_mode<synchronous>, transform_indices = @transform_6, window_bounds = array<i64: 1, 64>}, {transform_indices = @transform_7, window_bounds = array<i64: 250, 64>}]} {
    %c0 = arith.constant 0 : index
    %c0_0 = arith.constant 0 : index
    %0 = vector.load %arg1[%c0, %c0_0] : memref<250x128xf32, #tpu.memory_space<vmem>>, vector<250x128xf32>
    %1 = arith.truncf %0 : vector<250x128xf32> to vector<250x128xbf16>
    %c0_1 = arith.constant 0 : index
    %c0_2 = arith.constant 0 : index
    %2 = vector.load %arg2[%c0_1, %c0_2] : memref<128x256xbf16, #tpu.memory_space<vmem>>, vector<128x256xbf16>
    %cst = arith.constant dense<0.000000e+00> : vector<250x256xf32>
    %3 = tpu.matmul %1, %2, %cst {dimension_numbers = #tpu.dot_dimension_numbers<[1], [0], [0], [1], [0, 0, 1, 1], [], []>} : vector<250x128xbf16>, vector<128x256xbf16>, vector<250x256xf32> -> vector<250x256xf32>
    %c0_3 = arith.constant 0 : index
    %c0_4 = arith.constant 0 : index
    %4 = vector.load %arg3[%c0_3, %c0_4] : memref<1x256xf32, #tpu.memory_space<vmem>>, vector<1x256xf32>
    %5 = vector.broadcast %4 : vector<1x256xf32> to vector<250x256xf32>
    %6 = arith.addf %3, %5 : vector<250x256xf32>
    %cst_5 = arith.constant 0.000000e+00 : f32
    %7 = vector.broadcast %cst_5 : f32 to vector<250x256xf32>
    %8 = arith.maximumf %6, %7 : vector<250x256xf32>
    %9 = arith.truncf %8 : vector<250x256xf32> to vector<250x256xbf16>
    %c0_6 = arith.constant 0 : index
    %c0_7 = arith.constant 0 : index
    %10 = vector.load %arg4[%c0_6, %c0_7] : memref<256x256xbf16, #tpu.memory_space<vmem>>, vector<256x256xbf16>
    %cst_8 = arith.constant dense<0.000000e+00> : vector<250x256xf32>
    %11 = tpu.matmul %9, %10, %cst_8 {dimension_numbers = #tpu.dot_dimension_numbers<[1], [0], [0], [1], [0, 0, 1, 1], [], []>} : vector<250x256xbf16>, vector<256x256xbf16>, vector<250x256xf32> -> vector<250x256xf32>
    %c0_9 = arith.constant 0 : index
    %c0_10 = arith.constant 0 : index
    %12 = vector.load %arg5[%c0_9, %c0_10] : memref<1x256xf32, #tpu.memory_space<vmem>>, vector<1x256xf32>
    %13 = vector.broadcast %12 : vector<1x256xf32> to vector<250x256xf32>
    %14 = arith.addf %11, %13 : vector<250x256xf32>
    %cst_11 = arith.constant 0.000000e+00 : f32
    %15 = vector.broadcast %cst_11 : f32 to vector<250x256xf32>
    %16 = arith.maximumf %14, %15 : vector<250x256xf32>
    %17 = arith.truncf %16 : vector<250x256xf32> to vector<250x256xbf16>
    %c0_12 = arith.constant 0 : index
    %c0_13 = arith.constant 0 : index
    %18 = vector.load %arg6[%c0_12, %c0_13] : memref<256x64xbf16, #tpu.memory_space<vmem>>, vector<256x64xbf16>
    %cst_14 = arith.constant dense<0.000000e+00> : vector<250x64xf32>
    %19 = tpu.matmul %17, %18, %cst_14 {dimension_numbers = #tpu.dot_dimension_numbers<[1], [0], [0], [1], [0, 0, 1, 1], [], []>} : vector<250x256xbf16>, vector<256x64xbf16>, vector<250x64xf32> -> vector<250x64xf32>
    %c0_15 = arith.constant 0 : index
    %c0_16 = arith.constant 0 : index
    %20 = vector.load %arg7[%c0_15, %c0_16] : memref<1x64xf32, #tpu.memory_space<vmem>>, vector<1x64xf32>
    %21 = vector.broadcast %20 : vector<1x64xf32> to vector<250x64xf32>
    %22 = arith.addf %19, %21 : vector<250x64xf32>
    %c0_17 = arith.constant 0 : index
    %c0_18 = arith.constant 0 : index
    %23 = vector.load %arg8[%c0_17, %c0_18] : memref<250x64xf32, #tpu.memory_space<vmem>>, vector<250x64xf32>
    tpu.vector_store %arg8[%c0_17, %c0_18], %22 {strides = array<i32>} : memref<250x64xf32, #tpu.memory_space<vmem>>, vector<250x64xf32>,
    return
  }
  func.func @transform_0(%arg0: i32) -> (i32, i32) {
    %c0_i32 = arith.constant 0 : i32
    %c0_i32_0 = arith.constant 0 : i32
    return %arg0, %c0_i32 : i32, i32
  }
  func.func @transform_1(%arg0: i32) -> (i32, i32) {
    %c0_i32 = arith.constant 0 : i32
    %c0_i32_0 = arith.constant 0 : i32
    %c0_i32_1 = arith.constant 0 : i32
    return %c0_i32, %c0_i32_0 : i32, i32
  }
  func.func @transform_2(%arg0: i32) -> (i32, i32) {
    %c0_i32 = arith.constant 0 : i32
    %c0_i32_0 = arith.constant 0 : i32
    %c0_i32_1 = arith.constant 0 : i32
    return %c0_i32, %c0_i32_0 : i32, i32
  }
  func.func @transform_3(%arg0: i32) -> (i32, i32) {
    %c0_i32 = arith.constant 0 : i32
    %c0_i32_0 = arith.constant 0 : i32
    %c0_i32_1 = arith.constant 0 : i32
    return %c0_i32, %c0_i32_0 : i32, i32
  }
  func.func @transform_4(%arg0: i32) -> (i32, i32) {
    %c0_i32 = arith.constant 0 : i32
    %c0_i32_0 = arith.constant 0 : i32
    %c0_i32_1 = arith.constant 0 : i32
    return %c0_i32, %c0_i32_0 : i32, i32
  }
  func.func @transform_5(%arg0: i32) -> (i32, i32) {
    %c0_i32 = arith.constant 0 : i32
    %c0_i32_0 = arith.constant 0 : i32
    %c0_i32_1 = arith.constant 0 : i32
    return %c0_i32, %c0_i32_0 : i32, i32
  }
  func.func @transform_6(%arg0: i32) -> (i32, i32) {
    %c0_i32 = arith.constant 0 : i32
    %c0_i32_0 = arith.constant 0 : i32
    %c0_i32_1 = arith.constant 0 : i32
    return %c0_i32, %c0_i32_0 : i32, i32
  }
  func.func @transform_7(%arg0: i32) -> (i32, i32) {
    %c0_i32 = arith.constant 0 : i32
    %c0_i32_0 = arith.constant 0 : i32
    return %arg0, %c0_i32 : i32, i32
  }
}

</mosaic_0001>

<bundles_post_ra>
// kernel: tpu_custom_call.1
= control target key start
LH: loop header
LB: loop body
LE: loop exit
PB: predicated region body
PF: predicated region fallthrough
CT: control target
= control target key end

     0   :  { %12 = vsyncpa [#allocation3], 0  ;;  %s2539_s0 = inlined_call_operand.hbm [shape: f32[250,128], index: 0, kind: input, shape index: {}]   ;;  %s2540_s1 = inlined_call_operand.vmem [shape: bf16[128,256], index: 1, kind: input, shape index: {}]   ;;  %s2541_s2 = inlined_call_operand.vmem [shape: f32[1,256], index: 2, kind: input, shape index: {}]   ;;  %s2542_s3 = inlined_call_operand.hbm [shape: bf16[256,256], index: 3, kind: input, shape index: {}]   ;;  %s2543_s4 = inlined_call_operand.vmem [shape: f32[1,256], index: 4, kind: input, shape index: {}]   ;;  %s2544_s5 = inlined_call_operand.vmem [shape: bf16[256,64], index: 5, kind: input, shape index: {}]   ;;  %s2545_s6 = inlined_call_operand.vmem [shape: f32[1,64], index: 6, kind: input, shape index: {}]   ;;  %s2546_s7 = inlined_call_operand.vmem [shape: f32[250,64], index: 7, kind: output, shape index: {}]  }
   0x1   :  { %s18_s26 = sshll.u32 %s2539_s0, 4  ;;  %s19_s26 = int_to_ptr.hbm [resolvable:$true] %s18_s26 }
   0x2   :  { %13 = vsyncpa [#allocation5], 0  ;;  %s1859_s27 = smov [#allocation2]   ;;  %s35_s8 = sshll.u32 %s2542_s3, 4  ;;  %s36_s8 = int_to_ptr.hbm [resolvable:$true] %s35_s8 }
   0x3   :  { %s20_s28 = sshll.u32 %s1859_s27, 4  ;;  %s1860_s9 = smov 128   ;;  %s21_s28 = int_to_ptr.vmem [resolvable:$true] %s20_s28 }
   0x4   :  { %s1861_s10 = smov 8   ;;  %s1862_s11 = smov [#allocation4]  }
   0x5   :  { %26 = dma.hbm_to_vmem [thread:$0]  %s19_s26, 4096, %s21_s28, [#allocation3], %s1860_s9, %s1860_s9, %s1861_s10  }
   0x6   :  { %s37_s12 = sshll.u32 %s1862_s11, 4  ;;  %s38_s12 = int_to_ptr.vmem [resolvable:$true] %s37_s12 }
   0x7   :  { %43 = dma.hbm_to_vmem [thread:$0]  %s36_s8, 4096, %s38_s12, [#allocation5], %s1860_s9, %s1860_s9, %s1861_s10  }
   0x8   :  { %1855 = dma.done.wait [#allocation3], 4096  }
   0x9   :  { %1856 = vsyncadd [#allocation3], 4294963200 }
   0xa   :  { %1857 = dma.done.wait [#allocation5], 4096  }
   0xb   :  { %1858 = vsyncadd [#allocation5], 4294963200  ;;  %v1540_v0 = vld [vmem:[%s2540_s1 + $0x70] sm:$0xf]  ;;  %v1753_v1 = vld [vmem:[%s2540_s1 + $0x74] sm:$0xf0] }
   0xc   :  { %v1752_v2 = vld [vmem:[%s2540_s1 + $0x74] sm:$0xf]  ;;  %v1541_v3 = vor.u32 %v1753_v1, %v1540_v0  ;;  %v1542_v4 = vld [vmem:[%s2540_s1 + $0x78] sm:$0xf0]  ;;  %v1532_v5 = vld [vmem:[%s2540_s1 + $0x60] sm:$0xf] }
   0xd   :  { %v1751_v6 = vld [vmem:[%s2540_s1 + $0x64] sm:$0xf0]  ;;  %v1545_v7 = vor.u32 %v1752_v2, %v1542_v4  ;;  %v1750_v8 = vld [vmem:[%s2540_s1 + $0x64] sm:$0xf]  ;;  %v1534_v9 = vld [vmem:[%s2540_s1 + $0x68] sm:$0xf0] }
   0xe   :  { %208 = vmatpush.bf16.msra.mxu0 %v1541_v3  ;;  %v1533_v10 = vor.u32 %v1751_v6, %v1532_v5  ;;  %v1537_v11 = vor.u32 %v1750_v8, %v1534_v9  ;;  %v1524_v12 = vld [vmem:[%s2540_s1 + $0x50] sm:$0xf]  ;;  %v1749_v13 = vld [vmem:[%s2540_s1 + $0x54] sm:$0xf0]  ;;  %v1748_v14 = vld [vmem:[%s2540_s1 + $0x54] sm:$0xf] }
   0xf   :  { %297 = vmatpush.bf16.msra.mxu1 %v1545_v7  ;;  %v1526_v15 = vld [vmem:[%s2540_s1 + $0x58] sm:$0xf0]  ;;  %v1525_v16 = vor.u32 %v1749_v13, %v1524_v12  ;;  %v1516_v18 = vld [vmem:[%s2540_s1 + $0x40] sm:$0xf]  ;;  %v1747_v19 = vld [vmem:[%s2540_s1 + $0x44] sm:$0xf0] }
  0x10   :  { %v1529_v17 = vor.u32 %v1748_v14, %v1526_v15  ;;  %v1746_v20 = vld [vmem:[%s2540_s1 + $0x44] sm:$0xf]  ;;  %v1518_v21 = vld [vmem:[%s2540_s1 + $0x48] sm:$0xf0]  ;;  %v1517_v22 = vor.u32 %v1747_v19, %v1516_v18  ;;  %v1508_v24 = vld [vmem:[%s2540_s1 + $0x30] sm:$0xf] }
  0x11   :  { %v1521_v23 = vor.u32 %v1746_v20, %v1518_v21  ;;  %v1745_v25 = vld [vmem:[%s2540_s1 + $0x34] sm:$0xf0]  ;;  %v1744_v26 = vld [vmem:[%s2540_s1 + $0x34] sm:$0xf]  ;;  %v1510_v27 = vld [vmem:[%s2540_s1 + $0x38] sm:$0xf0] }
  0x12   :  { %209 = vmatpush.bf16.msra.mxu0 %v1533_v10  ;;  %v1509_v28 = vor.u32 %v1745_v25, %v1508_v24  ;;  %v1513_v29 = vor.u32 %v1744_v26, %v1510_v27  ;;  %v1500_v30 = vld [vmem:[%s2540_s1 + $0x20] sm:$0xf]  ;;  %v1743_v31 = vld [vmem:[%s2540_s1 + $0x24] sm:$0xf0]  ;;  %v1742_v32 = vld [vmem:[%s2540_s1 + $0x24] sm:$0xf] }
  0x13   :  { %298 = vmatpush.bf16.msra.mxu1 %v1537_v11  ;;  %v1502_v33 = vld [vmem:[%s2540_s1 + $0x28] sm:$0xf0]  ;;  %v1501_v34 = vor.u32 %v1743_v31, %v1500_v30  ;;  %v1492_v36 = vld [vmem:[%s2540_s1 + $0x10] sm:$0xf]  ;;  %v1741_v37 = vld [vmem:[%s2540_s1 + $0x14] sm:$0xf0] }
  0x14   :  { %v1505_v35 = vor.u32 %v1742_v32, %v1502_v33  ;;  %v1740_v38 = vld [vmem:[%s2540_s1 + $0x14] sm:$0xf]  ;;  %v1494_v39 = vld [vmem:[%s2540_s1 + $0x18] sm:$0xf0]  ;;  %v1493_v40 = vor.u32 %v1741_v37, %v1492_v36  ;;  %v1484_v42 = vld [vmem:[%s2540_s1] sm:$0xf] }
  0x15   :  { %v1497_v41 = vor.u32 %v1740_v38, %v1494_v39  ;;  %v1739_v43 = vld [vmem:[%s2540_s1 + $0x4] sm:$0xf0]  ;;  %v1738_v44 = vld [vmem:[%s2540_s1 + $0x4] sm:$0xf]  ;;  %v1486_v45 = vld [vmem:[%s2540_s1 + $0x8] sm:$0xf0] }
  0x16   :  { %210 = vmatpush.bf16.msra.mxu0 %v1525_v16  ;;  %v1768_v46 = vld [vmem:[#allocation4 + $0x74] sm:$0xf]  ;;  %v1606_v47 = vld [vmem:[#allocation4 + $0x78] sm:$0xf0]  ;;  %v1485_v50 = vor.u32 %v1739_v43, %v1484_v42  ;;  %v58_v51 = vld [vmem:[#allocation2] sm:$0xff]  ;;  %v1489_v53 = vor.u32 %v1738_v44, %v1486_v45  ;;  %vm1442_vm0 = vcmask 523264  }
  0x17   :  { %299 = vmatpush.bf16.msra.mxu1 %v1529_v17  ;;  %v1784_v48 = vld [vmem:[#allocation4 + $0xf4] sm:$0xf]  ;;  %v1670_v49 = vld [vmem:[#allocation4 + $0xf8] sm:$0xf0]  ;;  %v59_v52 = vld [vmem:[#allocation2 + $0x8] sm:$0xff]  ;;  %v1609_v54 = vor.u32 %v1768_v46, %v1606_v47  ;;  %vm1474_vm1 = vcmask 517120  }
  0x18   :  { %v1673_v55 = vor.u32 %v1784_v48, %v1670_v49  ;;  %v90_v56 = vpack.c.bf16 %v59_v52, %v58_v51  ;;  %v1766_v57 = vld [vmem:[#allocation4 + $0x64] sm:$0xf]  ;;  %v1598_v58 = vld [vmem:[#allocation4 + $0x68] sm:$0xf0]  ;;  %v60_v63 = vld [vmem:[#allocation2 + $0x10] sm:$0xff] }
  0x19   :  { %v1782_v59 = vld [vmem:[#allocation4 + $0xe4] sm:$0xf]  ;;  %v1601_v60 = vor.u32 %v1766_v57, %v1598_v58  ;;  %v1662_v61 = vld [vmem:[#allocation4 + $0xe8] sm:$0xf0]  ;;  %v61_v0 = vld [vmem:[#allocation2 + $0x18] sm:$0xff] }
  0x1a   :  { %211 = vmatpush.bf16.msra.mxu0 %v1517_v22  ;;  %v1665_v62 = vor.u32 %v1782_v59, %v1662_v61  ;;  %v91_v1 = vpack.c.bf16 %v61_v0, %v60_v63  ;;  %v62_v2 = vld [vmem:[#allocation2 + $0x20] sm:$0xff]  ;;  %v63_v3 = vld [vmem:[#allocation2 + $0x28] sm:$0xff]  ;;  %v1764_v5 = vld [vmem:[#allocation4 + $0x54] sm:$0xf] }
  0x1b   :  { %300 = vmatpush.bf16.msra.mxu1 %v1521_v23  ;;  %v92_v4 = vpack.c.bf16 %v63_v3, %v62_v2  ;;  %v1590_v6 = vld [vmem:[#allocation4 + $0x58] sm:$0xf0]  ;;  %v1780_v7 = vld [vmem:[#allocation4 + $0xd4] sm:$0xf]  ;;  %v66_v14 = vld [vmem:[#allocation2 + $0x40] sm:$0xff] }
  0x1c   :  { %v1593_v8 = vor.u32 %v1764_v5, %v1590_v6  ;;  %v1654_v9 = vld [vmem:[#allocation4 + $0xd8] sm:$0xf0]  ;;  %v64_v11 = vld [vmem:[#allocation2 + $0x30] sm:$0xff]  ;;  %v67_v15 = vld [vmem:[#allocation2 + $0x48] sm:$0xff] }
  0x1d   :  { %v1657_v10 = vor.u32 %v1780_v7, %v1654_v9  ;;  %v65_v12 = vld [vmem:[#allocation2 + $0x38] sm:$0xff]  ;;  %v94_v16 = vpack.c.bf16 %v67_v15, %v66_v14  ;;  %v1762_v17 = vld [vmem:[#allocation4 + $0x44] sm:$0xf]  ;;  %v1582_v18 = vld [vmem:[#allocation4 + $0x48] sm:$0xf0] }
  0x1e   :  { %212 = vmatpush.bf16.msra.mxu0 %v1509_v28  ;;  %v93_v13 = vpack.c.bf16 %v65_v12, %v64_v11  ;;  %v1778_v19 = vld [vmem:[#allocation4 + $0xc4] sm:$0xf]  ;;  %v1585_v20 = vor.u32 %v1762_v17, %v1582_v18  ;;  %v1646_v21 = vld [vmem:[#allocation4 + $0xc8] sm:$0xf0]  ;;  %v1604_v22 = vld [vmem:[#allocation4 + $0x70] sm:$0xf] }
  0x1f   :  { %301 = vmatpush.bf16.msra.mxu1 %v1513_v29  ;;  %v1769_v23 = vld [vmem:[#allocation4 + $0x74] sm:$0xf0]  ;;  %v1649_v24 = vor.u32 %v1778_v19, %v1646_v21  ;;  %v1668_v26 = vld [vmem:[#allocation4 + $0xf0] sm:$0xf]  ;;  %v1596_v32 = vld [vmem:[#allocation4 + $0x60] sm:$0xf] }
  0x20   :  { %v1605_v25 = vor.u32 %v1769_v23, %v1604_v22  ;;  %v1785_v27 = vld [vmem:[#allocation4 + $0xf4] sm:$0xf0]  ;;  %v68_v29 = vld [vmem:[#allocation2 + $0x50] sm:$0xff]  ;;  %v1767_v33 = vld [vmem:[#allocation4 + $0x64] sm:$0xf0] }
  0x21   :  { %v1669_v28 = vor.u32 %v1785_v27, %v1668_v26  ;;  %v69_v30 = vld [vmem:[#allocation2 + $0x58] sm:$0xff]  ;;  %v1783_v36 = vld [vmem:[#allocation4 + $0xe4] sm:$0xf0]  ;;  %v1588_v38 = vld [vmem:[#allocation4 + $0x50] sm:$0xf] }
  0x22   :  { %213 = vmatpush.bf16.msra.mxu0 %v1501_v34  ;;  %680 = vmatpush.bf16.msra.mxu2 %v1605_v25  ;;  %v95_v31 = vpack.c.bf16 %v69_v30, %v68_v29  ;;  %v1660_v34 = vld [vmem:[#allocation4 + $0xe0] sm:$0xf]  ;;  %v1765_v39 = vld [vmem:[#allocation4 + $0x54] sm:$0xf0]  ;;  %v1763_v45 = vld [vmem:[#allocation4 + $0x44] sm:$0xf0] }
  0x23   :  { %302 = vmatpush.bf16.msra.mxu1 %v1505_v35  ;;  %769 = vmatpush.bf16.msra.mxu3 %v1669_v28  ;;  %v1597_v35 = vor.u32 %v1767_v33, %v1596_v32  ;;  %v1661_v37 = vor.u32 %v1783_v36, %v1660_v34  ;;  %v1781_v42 = vld [vmem:[#allocation4 + $0xd4] sm:$0xf0]  ;;  %v1580_v44 = vld [vmem:[#allocation4 + $0x40] sm:$0xf]  ;;  %v1779_v47 = vld [vmem:[#allocation4 + $0xc4] sm:$0xf0] }
  0x24   :  { %v1644_v46 = vld [vmem:[#allocation4 + $0xc0] sm:$0xf]  ;;  %v1581_v48 = vor.u32 %v1763_v45, %v1580_v44  ;;  %v71_v51 = vld [vmem:[#allocation2 + $0x68] sm:$0xff]  ;;  %v1572_v52 = vld [vmem:[#allocation4 + $0x30] sm:$0xf] }
  0x25   :  { %v1645_v49 = vor.u32 %v1779_v47, %v1644_v46  ;;  %v1777_v57 = vld [vmem:[#allocation4 + $0xb4] sm:$0xf0]  ;;  %v1564_v59 = vld [vmem:[#allocation4 + $0x20] sm:$0xf]  ;;  %v1775_v63 = vld [vmem:[#allocation4 + $0xa4] sm:$0xf0] }
  0x26   :  { %214 = vmatpush.bf16.msra.mxu0 %v1493_v40  ;;  %v1652_v40 = vld [vmem:[#allocation4 + $0xd0] sm:$0xf]  ;;  %681 = vmatpush.bf16.msra.mxu2 %v1597_v35  ;;  %v1760_v0 = vld [vmem:[#allocation4 + $0x34] sm:$0xf]  ;;  %v1638_v5 = vld [vmem:[#allocation4 + $0xb8] sm:$0xf0] }
  0x27   :  { %303 = vmatpush.bf16.msra.mxu1 %v1497_v41  ;;  %v1589_v41 = vor.u32 %v1765_v39, %v1588_v38  ;;  %770 = vmatpush.bf16.msra.mxu3 %v1661_v37  ;;  %v1653_v43 = vor.u32 %v1781_v42, %v1652_v40  ;;  %v1776_v3 = vld [vmem:[#allocation4 + $0xb4] sm:$0xf]  ;;  %v1556_v7 = vld [vmem:[#allocation4 + $0x10] sm:$0xf]  ;;  %v1773_v11 = vld [vmem:[#allocation4 + $0x94] sm:$0xf0] }
  0x28   :  { %v1641_v6 = vor.u32 %v1776_v3, %v1638_v5  ;;  %v1620_v9 = vld [vmem:[#allocation4 + $0x90] sm:$0xf]  ;;  %v1755_v14 = vld [vmem:[#allocation4 + $0x4] sm:$0xf0]  ;;  %v1612_v15 = vld [vmem:[#allocation4 + $0x80] sm:$0xf] }
  0x29   :  { %v1621_v12 = vor.u32 %v1773_v11, %v1620_v9  ;;  %v1771_v17 = vld [vmem:[#allocation4 + $0x84] sm:$0xf0]  ;;  %v72_v18 = vld [vmem:[#allocation2 + $0x70] sm:$0xff]  ;;  %v73_v19 = vld [vmem:[#allocation2 + $0x78] sm:$0xff] }
  0x2a   :  { %215 = vmatpush.bf16.msra.mxu0 %v1485_v50  ;;  %682 = vmatpush.bf16.msra.mxu2 %v1589_v41  ;;  %v70_v50 = vld [vmem:[#allocation2 + $0x60] sm:$0xff]  ;;  %v97_v21 = vpack.c.bf16 %v73_v19, %v72_v18  ;;  %v1793_v22 = vld [vmem:[%s2544_s5 + $0x38] sm:$0xff]  ;;  %v75_v25 = vld [vmem:[#allocation2 + $0x88] sm:$0xff] }
  0x2b   :  { %304 = vmatpush.bf16.msra.mxu1 %v1489_v53  ;;  %771 = vmatpush.bf16.msra.mxu3 %v1653_v43  ;;  %v1761_v53 = vld [vmem:[#allocation4 + $0x34] sm:$0xf0]  ;;  %v122_v27 = vld [vmem:[%s2541_s2] sm:$0x3]  ;;  %v1758_v32 = vld [vmem:[#allocation4 + $0x24] sm:$0xf] }
  0x2c   :  { %v1801_v23 = vld [vmem:[%s2544_s5 + $0x78] sm:$0xff]  ;;  %v2014_v30 = vperm.slane %v122_v27, 0  ;;  %v1566_v33 = vld [vmem:[#allocation4 + $0x28] sm:$0xf0]  ;;  %v1774_v35 = vld [vmem:[#allocation4 + $0xa4] sm:$0xf] }
  0x2d   :  { %216 = vmatmul.bf16.vlgmr.msra.gmra.mxu0 %v90_v56  ;;  %v1569_v34 = vor.u32 %v1758_v32, %v1566_v33  ;;  %v1630_v36 = vld [vmem:[#allocation4 + $0xa8] sm:$0xf0]  ;;  %v78_v3 = vld [vmem:[#allocation2 + $0xa0] sm:$0xff]  ;;  %v1558_v11 = vld [vmem:[#allocation4 + $0x18] sm:$0xf0] }
  0x2e   :  { %858 = vmatpush.bf16.msrb.mxu0 %v1609_v54  ;;  %305 = vmatmul.bf16.vlgmr.msra.gmra.mxu1 %v90_v56  ;;  %v1636_v54 = vld [vmem:[#allocation4 + $0xb0] sm:$0xf]  ;;  %v1573_v56 = vor.u32 %v1761_v53, %v1572_v52  ;;  %v1633_v37 = vor.u32 %v1774_v35, %v1630_v36  ;;  %v1799_v36 = vld [vmem:[%s2544_s5 + $0x68] sm:$0xff] }
  0x2f   :  { %947 = vmatpush.bf16.msrb.mxu1 %v1673_v55  ;;  %683 = vmatpush.bf16.msra.mxu2 %v1581_v48  ;;  %v96_v55 = vpack.c.bf16 %v71_v51, %v70_v50  ;;  %v1637_v58 = vor.u32 %v1777_v57, %v1636_v54  ;;  %v76_v48 = vld [vmem:[#allocation2 + $0x90] sm:$0xff] }
  0x30   :  { %772 = vmatpush.bf16.msra.mxu3 %v1645_v49  ;;  %v77_v49 = vld [vmem:[#allocation2 + $0x98] sm:$0xff]  ;;  %v1792_v54 = vld [vmem:[%s2544_s5 + $0x30] sm:$0xff] }
  0x31   :  { %v99_v52 = vpack.c.bf16 %v77_v49, %v76_v48  ;;  %v83_v48 = vld [vmem:[#allocation2 + $0xc8] sm:$0xff] }
  0x32   :  { %859 = vmatpush.bf16.msrb.mxu0 %v1601_v60  ;;  %v1759_v60 = vld [vmem:[#allocation4 + $0x24] sm:$0xf0] }
  0x33   :  { %948 = vmatpush.bf16.msrb.mxu1 %v1665_v62  ;;  %684 = vmatpush.bf16.msra.mxu2 %v1573_v56  ;;  %v1565_v61 = vor.u32 %v1759_v60, %v1564_v59  ;;  %v1628_v62 = vld [vmem:[#allocation4 + $0xa0] sm:$0xf]  ;;  %v1800_v56 = vld [vmem:[%s2544_s5 + $0x70] sm:$0xff] }
  0x34   :  { %773 = vmatpush.bf16.msra.mxu3 %v1637_v58  ;;  %v1629_v2 = vor.u32 %v1775_v63, %v1628_v62 }
  0x36   :  { %860 = vmatpush.bf16.msrb.mxu0 %v1593_v8  ;;  %v1757_v8 = vld [vmem:[#allocation4 + $0x14] sm:$0xf0] }
  0x37   :  { %949 = vmatpush.bf16.msrb.mxu1 %v1657_v10  ;;  %685 = vmatpush.bf16.msra.mxu2 %v1565_v61  ;;  %v1557_v10 = vor.u32 %v1757_v8, %v1556_v7 }
  0x38   :  { %774 = vmatpush.bf16.msra.mxu3 %v1629_v2 }
  0x3a   :  { %861 = vmatpush.bf16.msrb.mxu0 %v1585_v20  ;;  %v1613_v20 = vor.u32 %v1771_v17, %v1612_v15 }
  0x3b   :  { %950 = vmatpush.bf16.msrb.mxu1 %v1649_v24  ;;  %686 = vmatpush.bf16.msra.mxu2 %v1557_v10  ;;  %v74_v24 = vld [vmem:[#allocation2 + $0x80] sm:$0xff]  ;;  %v1756_v10 = vld [vmem:[#allocation4 + $0x14] sm:$0xf] }
  0x3c   :  { %775 = vmatpush.bf16.msra.mxu3 %v1621_v12  ;;  %v98_v26 = vpack.c.bf16 %v75_v25, %v74_v24  ;;  %v1561_v12 = vor.u32 %v1756_v10, %v1558_v11  ;;  %v84_v10 = vld [vmem:[#allocation2 + $0xd0] sm:$0xff]  ;;  %v85_v11 = vld [vmem:[#allocation2 + $0xd8] sm:$0xff] }
  0x3d   :  { %221 = vmatmul.bf16.gmra.mxu0 %v91_v1 }
  0x3e   :  { %310 = vmatmul.bf16.gmra.mxu1 %v91_v1  ;;  %v1574_v1 = vld [vmem:[#allocation4 + $0x38] sm:$0xf0] }
  0x3f   :  { %951 = vmatpush.bf16.msrb.mxu1 %v1641_v6 }
  0x40   :  { %776 = vmatpush.bf16.msra.mxu3 %v1613_v20 }
  0x43   :  { %952 = vmatpush.bf16.msrb.mxu1 %v1633_v37 }
  0x44   :  { %1353 = vmatpush.bf16.msrb.mxu3 %v1801_v23 }
  0x48   :  { %1354 = vmatpush.bf16.msrb.mxu3 %v1800_v56  ;;  %v1754_v56 = vld [vmem:[#allocation4 + $0x4] sm:$0xf] }
  0x4c   :  { %1355 = vmatpush.bf16.msrb.mxu3 %v1799_v36 }
  0x4d   :  { %226 = vmatmul.bf16.gmra.mxu0 %v92_v4 }
  0x4e   :  { %315 = vmatmul.bf16.gmra.mxu1 %v92_v4  ;;  %v1577_v4 = vor.u32 %v1760_v0, %v1574_v1 }
  0x50   :  { %862 = vmatpush.bf16.msrb.mxu0 %v1577_v4  ;;  %v79_v4 = vld [vmem:[#allocation2 + $0xa8] sm:$0xff] }
  0x51   :  { %v100_v7 = vpack.c.bf16 %v79_v4, %v78_v3 }
  0x54   :  { %863 = vmatpush.bf16.msrb.mxu0 %v1569_v34  ;;  %v1791_v34 = vld [vmem:[%s2544_s5 + $0x28] sm:$0xff] }
  0x58   :  { %864 = vmatpush.bf16.msrb.mxu0 %v1561_v12 }
  0x5d   :  { %231 = vmatmul.bf16.gmra.mxu0 %v93_v13 }
  0x5e   :  { %320 = vmatmul.bf16.gmra.mxu1 %v93_v13  ;;  %v1548_v13 = vld [vmem:[#allocation4] sm:$0xf] }
  0x6d   :  { %236 = vmatmul.bf16.gmra.mxu0 %v94_v16 }
  0x6e   :  { %325 = vmatmul.bf16.gmra.mxu1 %v94_v16  ;;  %v1549_v16 = vor.u32 %v1755_v14, %v1548_v13  ;;  %v1772_v13 = vld [vmem:[#allocation4 + $0x94] sm:$0xf]  ;;  %v1622_v14 = vld [vmem:[#allocation4 + $0x98] sm:$0xf0] }
  0x6f   :  { %v1625_v15 = vor.u32 %v1772_v13, %v1622_v14  ;;  %v103_v14 = vpack.c.bf16 %v85_v11, %v84_v10 }
  0x70   :  { %687 = vmatpush.bf16.msra.mxu2 %v1549_v16 }
  0x71   :  { %953 = vmatpush.bf16.msrb.mxu1 %v1625_v15 }
  0x74   :  { %1264 = vmatpush.bf16.msrb.mxu2 %v1793_v22 }
  0x78   :  { %1265 = vmatpush.bf16.msrb.mxu2 %v1792_v54 }
  0x7c   :  { %1266 = vmatpush.bf16.msrb.mxu2 %v1791_v34  ;;  %v87_v34 = vld [vmem:[#allocation2 + $0xe8] sm:$0xff] }
  0x7d   :  { %241 = vmatmul.bf16.gmra.mxu0 %v95_v31 }
  0x7e   :  { %330 = vmatmul.bf16.gmra.mxu1 %v95_v31  ;;  %v2016_v31 = vperm.slane %v122_v27, 1  ;;  %v81_v27 = vld [vmem:[#allocation2 + $0xb8] sm:$0xff] }
  0x8d   :  { %246 = vmatmul.bf16.gmra.mxu0 %v96_v55 }
  0x8e   :  { %335 = vmatmul.bf16.gmra.mxu1 %v96_v55 }
  0x9d   :  { %251 = vmatmul.bf16.gmra.mxu0 %v97_v21 }
  0x9e   :  { %340 = vmatmul.bf16.gmra.mxu1 %v97_v21 }
  0xaa   :  { %v217_v28 = vpop.f32.mrf.mxu0 }
  0xab   :  { %v306_v29 = vpop.f32.mrf.mxu1  ;;  %v218_v38 = vadd.f32 %v217_v28, %v2014_v30 }
  0xac   :  { %v307_v39 = vadd.f32 %v306_v29, %v2016_v31 }
  0xad   :  { %256 = vmatmul.bf16.gmra.mxu0 %v98_v26  ;;  %v386_v44 = vmax.f32 %v218_v38, 0.0 }
  0xae   :  { %345 = vmatmul.bf16.gmra.mxu1 %v98_v26  ;;  %v387_v46 = vmax.f32 %v307_v39, 0.0  ;;  %v80_v26 = vld [vmem:[#allocation2 + $0xb0] sm:$0xff] }
  0xaf   :  { %v101_v32 = vpack.c.bf16 %v81_v27, %v80_v26 }
  0xb2   :  { %v219_v40 = vpop.f32.mrf.mxu0 }
  0xb3   :  { %v220_v41 = vadd.f32 %v219_v40, %v2014_v30  ;;  %v308_v42 = vpop.f32.mrf.mxu1 }
  0xb4   :  { %v309_v43 = vadd.f32 %v308_v42, %v2016_v31 }
  0xb5   :  { %v388_v45 = vmax.f32 %v220_v41, 0.0 }
  0xb6   :  { %v389_v47 = vmax.f32 %v309_v43, 0.0 }
  0xb7   :  { %v2022_v50 = vpack.c.bf16 %v388_v45, %v386_v44 }
  0xb8   :  { %v2024_v51 = vpack.c.bf16 %v389_v47, %v387_v46  ;;  %v82_v47 = vld [vmem:[#allocation2 + $0xc0] sm:$0xff] }
  0xb9   :  { %688 = vmatmul.bf16.vlgmr.msra.gmra.mxu2 %v2022_v50 }
  0xba   :  { %777 = vmatmul.bf16.vlgmr.msra.gmra.mxu3 %v2024_v51  ;;  %v222_v53 = vpop.f32.mrf.mxu0 }
  0xbb   :  { %v311_v55 = vpop.f32.mrf.mxu1  ;;  %v223_v57 = vadd.f32 %v222_v53, %v2014_v30  ;;  %v102_v53 = vpack.c.bf16 %v83_v48, %v82_v47 }
  0xbc   :  { %v312_v58 = vadd.f32 %v311_v55, %v2016_v31 }
  0xbd   :  { %261 = vmatmul.bf16.gmra.mxu0 %v99_v52  ;;  %v390_v63 = vmax.f32 %v223_v57, 0.0  ;;  %v1550_v57 = vld [vmem:[#allocation4 + $0x8] sm:$0xf0] }
  0xbe   :  { %350 = vmatmul.bf16.gmra.mxu1 %v99_v52  ;;  %v391_v1 = vmax.f32 %v312_v58, 0.0  ;;  %v1553_v58 = vor.u32 %v1754_v56, %v1550_v57 }
  0xc0   :  { %865 = vmatpush.bf16.msrb.mxu0 %v1553_v58 }
  0xc2   :  { %v224_v59 = vpop.f32.mrf.mxu0 }
  0xc3   :  { %v225_v60 = vadd.f32 %v224_v59, %v2014_v30  ;;  %v313_v61 = vpop.f32.mrf.mxu1  ;;  %v1770_v59 = vld [vmem:[#allocation4 + $0x84] sm:$0xf] }
  0xc4   :  { %v314_v62 = vadd.f32 %v313_v61, %v2016_v31 }
  0xc5   :  { %v392_v0 = vmax.f32 %v225_v60, 0.0  ;;  %v1614_v60 = vld [vmem:[#allocation4 + $0x88] sm:$0xf0] }
  0xc6   :  { %v393_v2 = vmax.f32 %v314_v62, 0.0  ;;  %v1617_v61 = vor.u32 %v1770_v59, %v1614_v60  ;;  %v1789_v60 = vld [vmem:[%s2544_s5 + $0x18] sm:$0xff] }
  0xc7   :  { %v2038_v5 = vpack.c.bf16 %v392_v0, %v390_v63 }
  0xc8   :  { %v2040_v6 = vpack.c.bf16 %v393_v2, %v391_v1  ;;  %954 = vmatpush.bf16.msrb.mxu1 %v1617_v61 }
  0xc9   :  { %693 = vmatmul.bf16.gmra.mxu2 %v2038_v5 }
  0xca   :  { %782 = vmatmul.bf16.gmra.mxu3 %v2040_v6  ;;  %v227_v8 = vpop.f32.mrf.mxu0 }
  0xcb   :  { %v316_v9 = vpop.f32.mrf.mxu1  ;;  %v228_v16 = vadd.f32 %v227_v8, %v2014_v30 }
  0xcc   :  { %v317_v17 = vadd.f32 %v316_v9, %v2016_v31 }
  0xcd   :  { %266 = vmatmul.bf16.gmra.mxu0 %v100_v7  ;;  %v394_v22 = vmax.f32 %v228_v16, 0.0  ;;  %v1790_v16 = vld [vmem:[%s2544_s5 + $0x20] sm:$0xff] }
  0xce   :  { %355 = vmatmul.bf16.gmra.mxu1 %v100_v7  ;;  %v395_v24 = vmax.f32 %v317_v17, 0.0  ;;  %1267 = vmatpush.bf16.msrb.mxu2 %v1790_v16 }
  0xd2   :  { %v229_v18 = vpop.f32.mrf.mxu0  ;;  %1268 = vmatpush.bf16.msrb.mxu2 %v1789_v60 }
  0xd3   :  { %v230_v19 = vadd.f32 %v229_v18, %v2014_v30  ;;  %v318_v20 = vpop.f32.mrf.mxu1  ;;  %v1798_v18 = vld [vmem:[%s2544_s5 + $0x60] sm:$0xff] }
  0xd4   :  { %v319_v21 = vadd.f32 %v318_v20, %v2016_v31  ;;  %1356 = vmatpush.bf16.msrb.mxu3 %v1798_v18 }
  0xd5   :  { %v396_v23 = vmax.f32 %v230_v19, 0.0 }
  0xd6   :  { %v397_v25 = vmax.f32 %v319_v21, 0.0 }
  0xd7   :  { %v2048_v28 = vpack.c.bf16 %v396_v23, %v394_v22 }
  0xd8   :  { %v2050_v29 = vpack.c.bf16 %v397_v25, %v395_v24 }
  0xd9   :  { %698 = vmatmul.bf16.gmra.mxu2 %v2048_v28 }
  0xda   :  { %787 = vmatmul.bf16.gmra.mxu3 %v2050_v29  ;;  %v232_v33 = vpop.f32.mrf.mxu0 }
  0xdb   :  { %v321_v35 = vpop.f32.mrf.mxu1  ;;  %v233_v37 = vadd.f32 %v232_v33, %v2014_v30  ;;  %v86_v33 = vld [vmem:[#allocation2 + $0xe0] sm:$0xff] }
  0xdc   :  { %v322_v38 = vadd.f32 %v321_v35, %v2016_v31 }
  0xdd   :  { %271 = vmatmul.bf16.gmra.mxu0 %v101_v32  ;;  %v398_v43 = vmax.f32 %v233_v37, 0.0  ;;  %v104_v37 = vpack.c.bf16 %v87_v34, %v86_v33  ;;  %v1788_v34 = vld [vmem:[%s2544_s5 + $0x10] sm:$0xff] }
  0xde   :  { %360 = vmatmul.bf16.gmra.mxu1 %v101_v32  ;;  %v399_v45 = vmax.f32 %v322_v38, 0.0  ;;  %1269 = vmatpush.bf16.msrb.mxu2 %v1788_v34 }
  0xe2   :  { %v234_v39 = vpop.f32.mrf.mxu0 }
  0xe3   :  { %v235_v40 = vadd.f32 %v234_v39, %v2014_v30  ;;  %v323_v41 = vpop.f32.mrf.mxu1 }
  0xe4   :  { %v324_v42 = vadd.f32 %v323_v41, %v2016_v31 }
  0xe5   :  { %v400_v44 = vmax.f32 %v235_v40, 0.0 }
  0xe6   :  { %v401_v46 = vmax.f32 %v324_v42, 0.0 }
  0xe7   :  { %v2064_v49 = vpack.c.bf16 %v400_v44, %v398_v43 }
  0xe8   :  { %v2066_v52 = vpack.c.bf16 %v401_v46, %v399_v45 }
  0xe9   :  { %703 = vmatmul.bf16.gmra.mxu2 %v2064_v49 }
  0xea   :  { %792 = vmatmul.bf16.gmra.mxu3 %v2066_v52  ;;  %v237_v54 = vpop.f32.mrf.mxu0 }
  0xeb   :  { %v326_v55 = vpop.f32.mrf.mxu1  ;;  %v238_v62 = vadd.f32 %v237_v54, %v2014_v30  ;;  %v88_v54 = vld [vmem:[#allocation2 + $0xf0] sm:$0xff] }
  0xec   :  { %v327_v63 = vadd.f32 %v326_v55, %v2016_v31  ;;  %v89_v55 = vld [vmem:[#allocation2 + $0xf8] sm:$0x3] }
  0xed   :  { %276 = vmatmul.bf16.gmra.mxu0 %v102_v53  ;;  %v402_v4 = vmax.f32 %v238_v62, 0.0  ;;  %v105_v58 = vpack.c.bf16 %v89_v55, %v88_v54  ;;  %v1797_v62 = vld [vmem:[%s2544_s5 + $0x58] sm:$0xff] }
  0xee   :  { %365 = vmatmul.bf16.gmra.mxu1 %v102_v53  ;;  %v403_v8 = vmax.f32 %v327_v63, 0.0  ;;  %1357 = vmatpush.bf16.msrb.mxu3 %v1797_v62 }
  0xf2   :  { %v239_v0 = vpop.f32.mrf.mxu0 }
  0xf3   :  { %v240_v1 = vadd.f32 %v239_v0, %v2014_v30  ;;  %v328_v2 = vpop.f32.mrf.mxu1 }
  0xf4   :  { %v329_v3 = vadd.f32 %v328_v2, %v2016_v31 }
  0xf5   :  { %v404_v7 = vmax.f32 %v240_v1, 0.0 }
  0xf6   :  { %v405_v9 = vmax.f32 %v329_v3, 0.0 }
  0xf7   :  { %v2074_v12 = vpack.c.bf16 %v404_v7, %v402_v4 }
  0xf8   :  { %v2076_v13 = vpack.c.bf16 %v405_v9, %v403_v8 }
  0xf9   :  { %708 = vmatmul.bf16.gmra.mxu2 %v2074_v12 }
  0xfa   :  { %797 = vmatmul.bf16.gmra.mxu3 %v2076_v13  ;;  %v242_v15 = vpop.f32.mrf.mxu0 }
  0xfb   :  { %v331_v17 = vpop.f32.mrf.mxu1  ;;  %v243_v19 = vadd.f32 %v242_v15, %v2014_v30 }
  0xfc   :  { %v332_v20 = vadd.f32 %v331_v17, %v2016_v31 }
  0xfd   :  { %281 = vmatmul.bf16.gmra.mxu0 %v103_v14  ;;  %v406_v25 = vmax.f32 %v243_v19, 0.0 }
  0xfe   :  { %370 = vmatmul.bf16.gmra.mxu1 %v103_v14  ;;  %v407_v27 = vmax.f32 %v332_v20, 0.0 }
 0x102   :  { %v244_v21 = vpop.f32.mrf.mxu0 }
 0x103   :  { %v245_v22 = vadd.f32 %v244_v21, %v2014_v30  ;;  %v333_v23 = vpop.f32.mrf.mxu1 }
 0x104   :  { %v334_v24 = vadd.f32 %v333_v23, %v2016_v31 }
 0x105   :  { %v408_v26 = vmax.f32 %v245_v22, 0.0 }
 0x106   :  { %v409_v32 = vmax.f32 %v334_v24, 0.0 }
 0x107   :  { %v2090_v35 = vpack.c.bf16 %v408_v26, %v406_v25 }
 0x108   :  { %v2092_v36 = vpack.c.bf16 %v409_v32, %v407_v27 }
 0x109   :  { %713 = vmatmul.bf16.gmra.mxu2 %v2090_v35 }
 0x10a   :  { %802 = vmatmul.bf16.gmra.mxu3 %v2092_v36  ;;  %v247_v38 = vpop.f32.mrf.mxu0 }
 0x10b   :  { %v336_v39 = vpop.f32.mrf.mxu1  ;;  %v248_v40 = vadd.f32 %v247_v38, %v2014_v30 }
 0x10c   :  { %v337_v41 = vadd.f32 %v336_v39, %v2016_v31 }
 0x10d   :  { %286 = vmatmul.bf16.gmra.mxu0 %v104_v37  ;;  %v410_v46 = vmax.f32 %v248_v40, 0.0 }
 0x10e   :  { %375 = vmatmul.bf16.gmra.mxu1 %v104_v37  ;;  %v411_v48 = vmax.f32 %v337_v41, 0.0  ;;  %v1796_v41 = vld [vmem:[%s2544_s5 + $0x50] sm:$0xff] }
 0x10f   :  { %1358 = vmatpush.bf16.msrb.mxu3 %v1796_v41 }
 0x112   :  { %v249_v42 = vpop.f32.mrf.mxu0 }
 0x113   :  { %v250_v43 = vadd.f32 %v249_v42, %v2014_v30  ;;  %v338_v44 = vpop.f32.mrf.mxu1 }
 0x114   :  { %v339_v45 = vadd.f32 %v338_v44, %v2016_v31 }
 0x115   :  { %v412_v47 = vmax.f32 %v250_v43, 0.0 }
 0x116   :  { %v413_v53 = vmax.f32 %v339_v45, 0.0 }
 0x117   :  { %v2100_v56 = vpack.c.bf16 %v412_v47, %v410_v46 }
 0x118   :  { %v2102_v57 = vpack.c.bf16 %v413_v53, %v411_v48 }
 0x119   :  { %718 = vmatmul.bf16.gmra.mxu2 %v2100_v56 }
 0x11a   :  { %807 = vmatmul.bf16.gmra.mxu3 %v2102_v57  ;;  %v252_v59 = vpop.f32.mrf.mxu0 }
 0x11b   :  { %v341_v61 = vpop.f32.mrf.mxu1  ;;  %v253_v63 = vadd.f32 %v252_v59, %v2014_v30 }
 0x11c   :  { %v342_v0 = vadd.f32 %v341_v61, %v2016_v31 }
 0x11d   :  { %291 = vmatmul.bf16.gmra.mxu0 %v105_v58  ;;  %v414_v7 = vmax.f32 %v253_v63, 0.0 }
 0x11e   :  { %380 = vmatmul.bf16.gmra.mxu1 %v105_v58  ;;  %v415_v9 = vmax.f32 %v342_v0, 0.0 }
 0x122   :  { %v254_v1 = vpop.f32.mrf.mxu0 }
 0x123   :  { %v255_v2 = vadd.f32 %v254_v1, %v2014_v30  ;;  %v343_v3 = vpop.f32.mrf.mxu1 }
 0x124   :  { %v344_v4 = vadd.f32 %v343_v3, %v2016_v31 }
 0x125   :  { %v416_v8 = vmax.f32 %v255_v2, 0.0 }
 0x126   :  { %v417_v10 = vmax.f32 %v344_v4, 0.0 }
 0x127   :  { %v2116_v11 = vpack.c.bf16 %v416_v8, %v414_v7 }
 0x128   :  { %v2118_v14 = vpack.c.bf16 %v417_v10, %v415_v9 }
 0x129   :  { %723 = vmatmul.bf16.gmra.mxu2 %v2116_v11 }
 0x12a   :  { %812 = vmatmul.bf16.gmra.mxu3 %v2118_v14  ;;  %v257_v15 = vpop.f32.mrf.mxu0 }
 0x12b   :  { %v346_v16 = vpop.f32.mrf.mxu1  ;;  %v258_v17 = vadd.f32 %v257_v15, %v2014_v30 }
 0x12c   :  { %v347_v18 = vadd.f32 %v346_v16, %v2016_v31 }
 0x12d   :  { %866 = vmatmul.bf16.vlgmr.msrb.gmra.mxu0 %v2022_v50  ;;  %v418_v23 = vmax.f32 %v258_v17, 0.0  ;;  %v2131_v50 = vld [vmem:[%s2543_s4] sm:$0x3] }
 0x12e   :  { %955 = vmatmul.bf16.vlgmr.msrb.gmra.mxu1 %v2024_v51  ;;  %v419_v25 = vmax.f32 %v347_v18, 0.0  ;;  %v2139_v32 = vperm.slane %v2131_v50, 0 }
 0x132   :  { %v259_v19 = vpop.f32.mrf.mxu0 }
 0x133   :  { %v260_v20 = vadd.f32 %v259_v19, %v2014_v30  ;;  %v348_v21 = vpop.f32.mrf.mxu1 }
 0x134   :  { %v349_v22 = vadd.f32 %v348_v21, %v2016_v31 }
 0x135   :  { %v420_v24 = vmax.f32 %v260_v20, 0.0 }
 0x136   :  { %v421_v26 = vmax.f32 %v349_v22, 0.0 }
 0x137   :  { %v2133_v51 = vpack.c.bf16 %v420_v24, %v418_v23 }
 0x138   :  { %v2135_v27 = vpack.c.bf16 %v421_v26, %v419_v25 }
 0x139   :  { %728 = vmatmul.bf16.gmra.mxu2 %v2133_v51 }
 0x13a   :  { %817 = vmatmul.bf16.gmra.mxu3 %v2135_v27  ;;  %v262_v33 = vpop.f32.mrf.mxu0 }
 0x13b   :  { %v351_v37 = vpop.f32.mrf.mxu1  ;;  %v263_v43 = vadd.f32 %v262_v33, %v2014_v30 }
 0x13c   :  { %v689_v38 = vpop.f32.mrf.mxu2  ;;  %v352_v44 = vadd.f32 %v351_v37, %v2016_v31 }
 0x13d   :  { %v690_v39 = vadd.f32 %v689_v38, %v2139_v32  ;;  %v778_v40 = vpop.f32.mrf.mxu3  ;;  %871 = vmatmul.bf16.gmra.mxu0 %v2038_v5  ;;  %v422_v5 = vmax.f32 %v263_v43, 0.0 }
 0x13e   :  { %960 = vmatmul.bf16.gmra.mxu1 %v2040_v6  ;;  %v423_v58 = vmax.f32 %v352_v44, 0.0 }
 0x13f   :  { %v779_v42 = vadd.f32 %v778_v40, %v690_v39  ;;  %v1787_v39 = vld [vmem:[%s2544_s5 + $0x8] sm:$0xff] }
 0x140   :  { %1270 = vmatpush.bf16.msrb.mxu2 %v1787_v39 }
 0x141   :  { %v1036_v63 = vmax.f32 %v779_v42, 0.0 }
 0x142   :  { %v264_v45 = vpop.f32.mrf.mxu0 }
 0x143   :  { %v265_v46 = vadd.f32 %v264_v45, %v2014_v30  ;;  %v353_v47 = vpop.f32.mrf.mxu1  ;;  %v1795_v45 = vld [vmem:[%s2544_s5 + $0x48] sm:$0xff] }
 0x144   :  { %v354_v48 = vadd.f32 %v353_v47, %v2016_v31  ;;  %v691_v53 = vpop.f32.mrf.mxu2  ;;  %1359 = vmatpush.bf16.msrb.mxu3 %v1795_v45  ;;  %v1786_v45 = vld [vmem:[%s2544_s5] sm:$0xff] }
 0x145   :  { %v424_v54 = vmax.f32 %v265_v46, 0.0  ;;  %v692_v6 = vadd.f32 %v691_v53, %v2139_v32  ;;  %v780_v55 = vpop.f32.mrf.mxu3  ;;  %1271 = vmatpush.bf16.msrb.mxu2 %v1786_v45 }
 0x146   :  { %v425_v59 = vmax.f32 %v354_v48, 0.0 }
 0x147   :  { %v781_v60 = vadd.f32 %v780_v55, %v692_v6  ;;  %v2156_v61 = vpack.c.bf16 %v424_v54, %v422_v5 }
 0x148   :  { %v2158_v62 = vpack.c.bf16 %v425_v59, %v423_v58 }
 0x149   :  { %v1038_v0 = vmax.f32 %v781_v60, 0.0  ;;  %733 = vmatmul.bf16.gmra.mxu2 %v2156_v61 }
 0x14a   :  { %822 = vmatmul.bf16.gmra.mxu3 %v2158_v62  ;;  %v267_v1 = vpop.f32.mrf.mxu0 }
 0x14b   :  { %v2162_v2 = vpack.c.bf16 %v1038_v0, %v1036_v63  ;;  %v356_v3 = vpop.f32.mrf.mxu1  ;;  %v268_v10 = vadd.f32 %v267_v1, %v2014_v30 }
 0x14c   :  { %v694_v4 = vpop.f32.mrf.mxu2  ;;  %v357_v15 = vadd.f32 %v356_v3, %v2016_v31 }
 0x14d   :  { %v695_v7 = vadd.f32 %v694_v4, %v2139_v32  ;;  %v783_v8 = vpop.f32.mrf.mxu3  ;;  %876 = vmatmul.bf16.gmra.mxu0 %v2048_v28  ;;  %v426_v21 = vmax.f32 %v268_v10, 0.0 }
 0x14e   :  { %965 = vmatmul.bf16.gmra.mxu1 %v2050_v29  ;;  %v427_v28 = vmax.f32 %v357_v15, 0.0 }
 0x14f   :  { %v784_v9 = vadd.f32 %v783_v8, %v695_v7 }
 0x151   :  { %v1040_v34 = vmax.f32 %v784_v9, 0.0 }
 0x152   :  { %v269_v16 = vpop.f32.mrf.mxu0 }
 0x153   :  { %v270_v17 = vadd.f32 %v269_v16, %v2014_v30  ;;  %v358_v18 = vpop.f32.mrf.mxu1 }
 0x154   :  { %v359_v19 = vadd.f32 %v358_v18, %v2016_v31  ;;  %v696_v20 = vpop.f32.mrf.mxu2 }
 0x155   :  { %v428_v22 = vmax.f32 %v270_v17, 0.0  ;;  %v697_v23 = vadd.f32 %v696_v20, %v2139_v32  ;;  %v785_v24 = vpop.f32.mrf.mxu3 }
 0x156   :  { %v429_v25 = vmax.f32 %v359_v19, 0.0 }
 0x157   :  { %v786_v29 = vadd.f32 %v785_v24, %v697_v23  ;;  %v2172_v26 = vpack.c.bf16 %v428_v22, %v426_v21 }
 0x158   :  { %v2174_v33 = vpack.c.bf16 %v429_v25, %v427_v28 }
 0x159   :  { %v1042_v37 = vmax.f32 %v786_v29, 0.0  ;;  %738 = vmatmul.bf16.gmra.mxu2 %v2172_v26 }
 0x15a   :  { %827 = vmatmul.bf16.gmra.mxu3 %v2174_v33  ;;  %v272_v38 = vpop.f32.mrf.mxu0 }
 0x15b   :  { %v361_v40 = vpop.f32.mrf.mxu1  ;;  %v2181_v41 = vpack.c.bf16 %v1042_v37, %v1040_v34  ;;  %v273_v47 = vadd.f32 %v272_v38, %v2014_v30 }
 0x15c   :  { %v699_v42 = vpop.f32.mrf.mxu2  ;;  %v362_v48 = vadd.f32 %v361_v40, %v2016_v31 }
 0x15d   :  { %v700_v43 = vadd.f32 %v699_v42, %v2139_v32  ;;  %v788_v44 = vpop.f32.mrf.mxu3  ;;  %881 = vmatmul.bf16.gmra.mxu0 %v2064_v49  ;;  %v430_v49 = vmax.f32 %v273_v47, 0.0 }
 0x15e   :  { %970 = vmatmul.bf16.gmra.mxu1 %v2066_v52  ;;  %v431_v60 = vmax.f32 %v362_v48, 0.0 }
 0x15f   :  { %v789_v46 = vadd.f32 %v788_v44, %v700_v43 }
 0x161   :  { %v1044_v4 = vmax.f32 %v789_v46, 0.0 }
 0x162   :  { %v274_v53 = vpop.f32.mrf.mxu0 }
 0x163   :  { %v275_v5 = vadd.f32 %v274_v53, %v2014_v30  ;;  %v363_v54 = vpop.f32.mrf.mxu1 }
 0x164   :  { %v364_v6 = vadd.f32 %v363_v54, %v2016_v31  ;;  %v701_v55 = vpop.f32.mrf.mxu2  ;;  %v1794_v54 = vld [vmem:[%s2544_s5 + $0x40] sm:$0xff] }
 0x165   :  { %v432_v58 = vmax.f32 %v275_v5, 0.0  ;;  %v702_v52 = vadd.f32 %v701_v55, %v2139_v32  ;;  %v790_v59 = vpop.f32.mrf.mxu3  ;;  %1360 = vmatpush.bf16.msrb.mxu3 %v1794_v54 }
 0x166   :  { %v433_v63 = vmax.f32 %v364_v6, 0.0 }
 0x167   :  { %v791_v0 = vadd.f32 %v790_v59, %v702_v52  ;;  %v2194_v1 = vpack.c.bf16 %v432_v58, %v430_v49 }
 0x168   :  { %v2196_v3 = vpack.c.bf16 %v433_v63, %v431_v60 }
 0x169   :  { %v1046_v7 = vmax.f32 %v791_v0, 0.0  ;;  %743 = vmatmul.bf16.gmra.mxu2 %v2194_v1 }
 0x16a   :  { %832 = vmatmul.bf16.gmra.mxu3 %v2196_v3  ;;  %v277_v8 = vpop.f32.mrf.mxu0 }
 0x16b   :  { %v366_v9 = vpop.f32.mrf.mxu1  ;;  %v2200_v10 = vpack.c.bf16 %v1046_v7, %v1044_v4  ;;  %v278_v19 = vadd.f32 %v277_v8, %v2014_v30 }
 0x16c   :  { %v704_v15 = vpop.f32.mrf.mxu2  ;;  %v367_v20 = vadd.f32 %v366_v9, %v2016_v31 }
 0x16d   :  { %v705_v16 = vadd.f32 %v704_v15, %v2139_v32  ;;  %v793_v17 = vpop.f32.mrf.mxu3  ;;  %886 = vmatmul.bf16.gmra.mxu0 %v2074_v12  ;;  %v434_v25 = vmax.f32 %v278_v19, 0.0 }
 0x16e   :  { %975 = vmatmul.bf16.gmra.mxu1 %v2076_v13  ;;  %v435_v12 = vmax.f32 %v367_v20, 0.0 }
 0x16f   :  { %v794_v18 = vadd.f32 %v793_v17, %v705_v16 }
 0x171   :  { %v1048_v42 = vmax.f32 %v794_v18, 0.0 }
 0x172   :  { %v279_v21 = vpop.f32.mrf.mxu0 }
 0x173   :  { %v280_v22 = vadd.f32 %v279_v21, %v2014_v30  ;;  %v368_v23 = vpop.f32.mrf.mxu1 }
 0x174   :  { %v369_v24 = vadd.f32 %v368_v23, %v2016_v31  ;;  %v706_v28 = vpop.f32.mrf.mxu2 }
 0x175   :  { %v436_v29 = vmax.f32 %v280_v22, 0.0  ;;  %v707_v34 = vadd.f32 %v706_v28, %v2139_v32  ;;  %v795_v37 = vpop.f32.mrf.mxu3 }
 0x176   :  { %v437_v38 = vmax.f32 %v369_v24, 0.0 }
 0x177   :  { %v796_v13 = vadd.f32 %v795_v37, %v707_v34  ;;  %v2210_v39 = vpack.c.bf16 %v436_v29, %v434_v25 }
 0x178   :  { %v2212_v40 = vpack.c.bf16 %v437_v38, %v435_v12 }
 0x179   :  { %v1050_v43 = vmax.f32 %v796_v13, 0.0  ;;  %748 = vmatmul.bf16.gmra.mxu2 %v2210_v39 }
 0x17a   :  { %837 = vmatmul.bf16.gmra.mxu3 %v2212_v40  ;;  %v282_v44 = vpop.f32.mrf.mxu0 }
 0x17b   :  { %v371_v46 = vpop.f32.mrf.mxu1  ;;  %v2219_v47 = vpack.c.bf16 %v1050_v43, %v1048_v42  ;;  %v283_v55 = vadd.f32 %v282_v44, %v2014_v30 }
 0x17c   :  { %v709_v48 = vpop.f32.mrf.mxu2  ;;  %v372_v49 = vadd.f32 %v371_v46, %v2016_v31 }
 0x17d   :  { %v710_v53 = vadd.f32 %v709_v48, %v2139_v32  ;;  %v798_v5 = vpop.f32.mrf.mxu3  ;;  %891 = vmatmul.bf16.gmra.mxu0 %v2090_v35  ;;  %v438_v35 = vmax.f32 %v283_v55, 0.0 }
 0x17e   :  { %980 = vmatmul.bf16.gmra.mxu1 %v2092_v36  ;;  %v439_v7 = vmax.f32 %v372_v49, 0.0 }
 0x17f   :  { %v799_v6 = vadd.f32 %v798_v5, %v710_v53 }
 0x181   :  { %v1052_v17 = vmax.f32 %v799_v6, 0.0 }
 0x182   :  { %v284_v58 = vpop.f32.mrf.mxu0 }
 0x183   :  { %v285_v52 = vadd.f32 %v284_v58, %v2014_v30  ;;  %v373_v59 = vpop.f32.mrf.mxu1 }
 0x184   :  { %v374_v60 = vadd.f32 %v373_v59, %v2016_v31  ;;  %v711_v63 = vpop.f32.mrf.mxu2 }
 0x185   :  { %v440_v0 = vmax.f32 %v285_v52, 0.0  ;;  %v712_v36 = vadd.f32 %v711_v63, %v2139_v32  ;;  %v800_v4 = vpop.f32.mrf.mxu3 }
 0x186   :  { %v441_v8 = vmax.f32 %v374_v60, 0.0 }
 0x187   :  { %v801_v9 = vadd.f32 %v800_v4, %v712_v36  ;;  %v2232_v15 = vpack.c.bf16 %v440_v0, %v438_v35 }
 0x188   :  { %v2234_v16 = vpack.c.bf16 %v441_v8, %v439_v7 }
 0x189   :  { %v1054_v18 = vmax.f32 %v801_v9, 0.0  ;;  %753 = vmatmul.bf16.gmra.mxu2 %v2232_v15 }
 0x18a   :  { %842 = vmatmul.bf16.gmra.mxu3 %v2234_v16  ;;  %v287_v19 = vpop.f32.mrf.mxu0 }
 0x18b   :  { %v376_v20 = vpop.f32.mrf.mxu1  ;;  %v2238_v21 = vpack.c.bf16 %v1054_v18, %v1052_v17  ;;  %v288_v25 = vadd.f32 %v287_v19, %v2014_v30 }
 0x18c   :  { %v714_v22 = vpop.f32.mrf.mxu2  ;;  %v377_v29 = vadd.f32 %v376_v20, %v2016_v31 }
 0x18d   :  { %v715_v23 = vadd.f32 %v714_v22, %v2139_v32  ;;  %v803_v24 = vpop.f32.mrf.mxu3  ;;  %896 = vmatmul.bf16.gmra.mxu0 %v2100_v56  ;;  %v442_v42 = vmax.f32 %v288_v25, 0.0 }
 0x18e   :  { %985 = vmatmul.bf16.gmra.mxu1 %v2102_v57  ;;  %v443_v56 = vmax.f32 %v377_v29, 0.0 }
 0x18f   :  { %v804_v28 = vadd.f32 %v803_v24, %v715_v23 }
 0x191   :  { %v1056_v5 = vmax.f32 %v804_v28, 0.0 }
 0x192   :  { %v289_v34 = vpop.f32.mrf.mxu0 }
 0x193   :  { %v290_v37 = vadd.f32 %v289_v34, %v2014_v30  ;;  %v378_v12 = vpop.f32.mrf.mxu1 }
 0x194   :  { %v379_v38 = vadd.f32 %v378_v12, %v2016_v31  ;;  %v716_v13 = vpop.f32.mrf.mxu2 }
 0x195   :  { %v444_v43 = vmax.f32 %v290_v37, 0.0  ;;  %v717_v44 = vadd.f32 %v716_v13, %v2139_v32  ;;  %v805_v45 = vpop.f32.mrf.mxu3 }
 0x196   :  { %v445_v46 = vmax.f32 %v379_v38, 0.0 }
 0x197   :  { %v806_v57 = vadd.f32 %v805_v45, %v717_v44  ;;  %v2248_v48 = vpack.c.bf16 %v444_v43, %v442_v42 }
 0x198   :  { %v2250_v53 = vpack.c.bf16 %v445_v46, %v443_v56 }
 0x199   :  { %v1058_v54 = vmax.f32 %v806_v57, 0.0  ;;  %758 = vmatmul.bf16.gmra.mxu2 %v2248_v48 }
 0x19a   :  { %847 = vmatmul.bf16.gmra.mxu3 %v2250_v53  ;;  %v292_v6 = vpop.f32.mrf.mxu0 }
 0x19b   :  { %v381_v55 = vpop.f32.mrf.mxu1  ;;  %v2254_v49 = vpack.c.bf16 %v1058_v54, %v1056_v5  ;;  %v293_v63 = vadd.f32 %v292_v6, %v2014_v30 }
 0x19c   :  { %v719_v58 = vpop.f32.mrf.mxu2  ;;  %v382_v35 = vadd.f32 %v381_v55, %v2016_v31 }
 0x19d   :  { %v720_v52 = vadd.f32 %v719_v58, %v2139_v32  ;;  %v808_v59 = vpop.f32.mrf.mxu3  ;;  %901 = vmatmul.bf16.gmra.mxu0 %v2116_v11  ;;  %v446_v9 = vmax.f32 %v293_v63, 0.0 }
 0x19e   :  { %990 = vmatmul.bf16.gmra.mxu1 %v2118_v14  ;;  %v447_v11 = vmax.f32 %v382_v35, 0.0 }
 0x19f   :  { %v809_v60 = vadd.f32 %v808_v59, %v720_v52 }
 0x1a1   :  { %v1060_v24 = vmax.f32 %v809_v60, 0.0 }
 0x1a2   :  { %v294_v0 = vpop.f32.mrf.mxu0 }
 0x1a3   :  { %v295_v36 = vadd.f32 %v294_v0, %v2014_v30  ;;  %v383_v4 = vpop.f32.mrf.mxu1 }
 0x1a4   :  { %v384_v7 = vadd.f32 %v383_v4, %v2016_v31  ;;  %v721_v8 = vpop.f32.mrf.mxu2  ;;  %v2271_v31 = vperm.slane %v2131_v50, 1 }
 0x1a5   :  { %v448_v17 = vmax.f32 %v295_v36, 0.0  ;;  %v722_v18 = vadd.f32 %v721_v8, %v2139_v32  ;;  %v810_v19 = vpop.f32.mrf.mxu3 }
 0x1a6   :  { %v449_v20 = vmax.f32 %v384_v7, 0.0 }
 0x1a7   :  { %v811_v14 = vadd.f32 %v810_v19, %v722_v18  ;;  %v2264_v22 = vpack.c.bf16 %v448_v17, %v446_v9 }
 0x1a8   :  { %v2266_v23 = vpack.c.bf16 %v449_v20, %v447_v11 }
 0x1a9   :  { %v1062_v28 = vmax.f32 %v811_v14, 0.0  ;;  %763 = vmatmul.bf16.gmra.mxu2 %v2264_v22 }
 0x1aa   :  { %852 = vmatmul.bf16.gmra.mxu3 %v2266_v23  ;;  %v867_v30 = vpop.f32.mrf.mxu0 }
 0x1ab   :  { %v956_v25 = vpop.f32.mrf.mxu1  ;;  %v2273_v29 = vpack.c.bf16 %v1062_v28, %v1060_v24  ;;  %v868_v38 = vadd.f32 %v867_v30, %v2271_v31 }
 0x1ac   :  { %v724_v34 = vpop.f32.mrf.mxu2 }
 0x1ad   :  { %v725_v37 = vadd.f32 %v724_v34, %v2139_v32  ;;  %v813_v12 = vpop.f32.mrf.mxu3  ;;  %906 = vmatmul.bf16.gmra.mxu0 %v2133_v51  ;;  %v957_v43 = vadd.f32 %v956_v25, %v868_v38 }
 0x1ae   :  { %995 = vmatmul.bf16.gmra.mxu1 %v2135_v27 }
 0x1af   :  { %v814_v13 = vadd.f32 %v813_v12, %v725_v37  ;;  %v1037_v5 = vmax.f32 %v957_v43, 0.0 }
 0x1b1   :  { %v1064_v55 = vmax.f32 %v814_v13, 0.0 }
 0x1b2   :  { %v869_v42 = vpop.f32.mrf.mxu0 }
 0x1b3   :  { %v870_v44 = vadd.f32 %v869_v42, %v2271_v31  ;;  %v958_v50 = vpop.f32.mrf.mxu1 }
 0x1b4   :  { %v726_v45 = vpop.f32.mrf.mxu2 }
 0x1b5   :  { %v959_v56 = vadd.f32 %v958_v50, %v870_v44  ;;  %v727_v46 = vadd.f32 %v726_v45, %v2139_v32  ;;  %v815_v57 = vpop.f32.mrf.mxu3 }
 0x1b7   :  { %v1039_v54 = vmax.f32 %v959_v56, 0.0  ;;  %v816_v6 = vadd.f32 %v815_v57, %v727_v46 }
 0x1b9   :  { %v1101_v51 = vpack.c.bf16 %v1039_v54, %v1037_v5  ;;  %v1066_v58 = vmax.f32 %v816_v6, 0.0  ;;  %1272 = vmatmul.bf16.vlgmr.msrb.gmra.mxu2 %v2162_v2 }
 0x1ba   :  { %v872_v27 = vpop.f32.mrf.mxu0 }
 0x1bb   :  { %v961_v52 = vpop.f32.mrf.mxu1  ;;  %1361 = vmatmul.bf16.vlgmr.msrb.gmra.mxu3 %v1101_v51  ;;  %v2282_v59 = vpack.c.bf16 %v1066_v58, %v1064_v55  ;;  %v873_v0 = vadd.f32 %v872_v27, %v2271_v31 }
 0x1bc   :  { %v729_v60 = vpop.f32.mrf.mxu2 }
 0x1bd   :  { %v730_v63 = vadd.f32 %v729_v60, %v2139_v32  ;;  %v818_v35 = vpop.f32.mrf.mxu3  ;;  %911 = vmatmul.bf16.gmra.mxu0 %v2156_v61  ;;  %v962_v7 = vadd.f32 %v961_v52, %v873_v0 }
 0x1be   :  { %1000 = vmatmul.bf16.gmra.mxu1 %v2158_v62 }
 0x1bf   :  { %v819_v36 = vadd.f32 %v818_v35, %v730_v63  ;;  %v1041_v11 = vmax.f32 %v962_v7, 0.0 }
 0x1c1   :  { %v1068_v24 = vmax.f32 %v819_v36, 0.0 }
 0x1c2   :  { %v874_v4 = vpop.f32.mrf.mxu0 }
 0x1c3   :  { %v875_v2 = vadd.f32 %v874_v4, %v2271_v31  ;;  %v963_v8 = vpop.f32.mrf.mxu1 }
 0x1c4   :  { %v731_v9 = vpop.f32.mrf.mxu2 }
 0x1c5   :  { %v964_v17 = vadd.f32 %v963_v8, %v875_v2  ;;  %v732_v18 = vadd.f32 %v731_v9, %v2139_v32  ;;  %v820_v19 = vpop.f32.mrf.mxu3 }
 0x1c7   :  { %v1043_v20 = vmax.f32 %v964_v17, 0.0  ;;  %v821_v14 = vadd.f32 %v820_v19, %v732_v18 }
 0x1c9   :  { %v1070_v61 = vmax.f32 %v821_v14, 0.0  ;;  %1277 = vmatmul.bf16.gmra.mxu2 %v2181_v41  ;;  %v1103_v62 = vpack.c.bf16 %v1043_v20, %v1041_v11 }
 0x1ca   :  { %v877_v28 = vpop.f32.mrf.mxu0 }
 0x1cb   :  { %v966_v30 = vpop.f32.mrf.mxu1  ;;  %1366 = vmatmul.bf16.gmra.mxu3 %v1103_v62  ;;  %v2291_v25 = vpack.c.bf16 %v1070_v61, %v1068_v24  ;;  %v878_v38 = vadd.f32 %v877_v28, %v2271_v31 }
 0x1cc   :  { %v734_v34 = vpop.f32.mrf.mxu2 }
 0x1cd   :  { %v735_v37 = vadd.f32 %v734_v34, %v2139_v32  ;;  %v823_v12 = vpop.f32.mrf.mxu3  ;;  %916 = vmatmul.bf16.gmra.mxu0 %v2172_v26  ;;  %v967_v43 = vadd.f32 %v966_v30, %v878_v38 }
 0x1ce   :  { %1005 = vmatmul.bf16.gmra.mxu1 %v2174_v33 }
 0x1cf   :  { %v824_v13 = vadd.f32 %v823_v12, %v735_v37  ;;  %v1045_v57 = vmax.f32 %v967_v43, 0.0 }
 0x1d1   :  { %v1072_v6 = vmax.f32 %v824_v13, 0.0 }
 0x1d2   :  { %v879_v42 = vpop.f32.mrf.mxu0 }
 0x1d3   :  { %v880_v41 = vadd.f32 %v879_v42, %v2271_v31  ;;  %v968_v44 = vpop.f32.mrf.mxu1 }
 0x1d4   :  { %v736_v50 = vpop.f32.mrf.mxu2 }
 0x1d5   :  { %v969_v45 = vadd.f32 %v968_v44, %v880_v41  ;;  %v737_v56 = vadd.f32 %v736_v50, %v2139_v32  ;;  %v825_v46 = vpop.f32.mrf.mxu3 }
 0x1d7   :  { %v1047_v5 = vmax.f32 %v969_v45, 0.0  ;;  %v826_v54 = vadd.f32 %v825_v46, %v737_v56 }
 0x1d9   :  { %v1074_v26 = vmax.f32 %v826_v54, 0.0  ;;  %1282 = vmatmul.bf16.gmra.mxu2 %v2200_v10  ;;  %v1105_v33 = vpack.c.bf16 %v1047_v5, %v1045_v57 }
 0x1da   :  { %v882_v55 = vpop.f32.mrf.mxu0 }
 0x1db   :  { %v971_v51 = vpop.f32.mrf.mxu1  ;;  %1371 = vmatmul.bf16.gmra.mxu3 %v1105_v33  ;;  %v2300_v58 = vpack.c.bf16 %v1074_v26, %v1072_v6  ;;  %v883_v63 = vadd.f32 %v882_v55, %v2271_v31 }
 0x1dc   :  { %v739_v27 = vpop.f32.mrf.mxu2 }
 0x1dd   :  { %v740_v52 = vadd.f32 %v739_v27, %v2139_v32  ;;  %v828_v60 = vpop.f32.mrf.mxu3  ;;  %921 = vmatmul.bf16.gmra.mxu0 %v2194_v1  ;;  %v972_v36 = vadd.f32 %v971_v51, %v883_v63 }
 0x1de   :  { %1010 = vmatmul.bf16.gmra.mxu1 %v2196_v3 }
 0x1df   :  { %v829_v35 = vadd.f32 %v828_v60, %v740_v52  ;;  %v1049_v17 = vmax.f32 %v972_v36, 0.0 }
 0x1e1   :  { %v1076_v11 = vmax.f32 %v829_v35, 0.0 }
 0x1e2   :  { %v884_v0 = vpop.f32.mrf.mxu0 }
 0x1e3   :  { %v885_v10 = vadd.f32 %v884_v0, %v2271_v31  ;;  %v973_v4 = vpop.f32.mrf.mxu1 }
 0x1e4   :  { %v741_v7 = vpop.f32.mrf.mxu2 }
 0x1e5   :  { %v974_v2 = vadd.f32 %v973_v4, %v885_v10  ;;  %v742_v8 = vadd.f32 %v741_v7, %v2139_v32  ;;  %v830_v9 = vpop.f32.mrf.mxu3 }
 0x1e7   :  { %v1051_v18 = vmax.f32 %v974_v2, 0.0  ;;  %v831_v19 = vadd.f32 %v830_v9, %v742_v8 }
 0x1e9   :  { %v1078_v1 = vmax.f32 %v831_v19, 0.0  ;;  %1287 = vmatmul.bf16.gmra.mxu2 %v2219_v47  ;;  %v1107_v3 = vpack.c.bf16 %v1051_v18, %v1049_v17 }
 0x1ea   :  { %v887_v20 = vpop.f32.mrf.mxu0 }
 0x1eb   :  { %v976_v14 = vpop.f32.mrf.mxu1  ;;  %1376 = vmatmul.bf16.gmra.mxu3 %v1107_v3  ;;  %v2309_v24 = vpack.c.bf16 %v1078_v1, %v1076_v11  ;;  %v888_v30 = vadd.f32 %v887_v20, %v2271_v31 }
 0x1ec   :  { %v744_v61 = vpop.f32.mrf.mxu2 }
 0x1ed   :  { %v745_v62 = vadd.f32 %v744_v61, %v2139_v32  ;;  %v833_v28 = vpop.f32.mrf.mxu3  ;;  %926 = vmatmul.bf16.gmra.mxu0 %v2210_v39  ;;  %v977_v12 = vadd.f32 %v976_v14, %v888_v30 }
 0x1ee   :  { %1015 = vmatmul.bf16.gmra.mxu1 %v2212_v40 }
 0x1ef   :  { %v834_v34 = vadd.f32 %v833_v28, %v745_v62  ;;  %v1053_v44 = vmax.f32 %v977_v12, 0.0 }
 0x1f1   :  { %v1080_v56 = vmax.f32 %v834_v34, 0.0 }
 0x1f2   :  { %v889_v37 = vpop.f32.mrf.mxu0 }
 0x1f3   :  { %v890_v47 = vadd.f32 %v889_v37, %v2271_v31  ;;  %v978_v38 = vpop.f32.mrf.mxu1 }
 0x1f4   :  { %v746_v13 = vpop.f32.mrf.mxu2 }
 0x1f5   :  { %v979_v42 = vadd.f32 %v978_v38, %v890_v47  ;;  %v747_v43 = vadd.f32 %v746_v13, %v2139_v32  ;;  %v835_v41 = vpop.f32.mrf.mxu3 }
 0x1f7   :  { %v1055_v50 = vmax.f32 %v979_v42, 0.0  ;;  %v836_v45 = vadd.f32 %v835_v41, %v747_v43 }
 0x1f9   :  { %v1109_v39 = vpack.c.bf16 %v1055_v50, %v1053_v44  ;;  %v1082_v46 = vmax.f32 %v836_v45, 0.0  ;;  %1292 = vmatmul.bf16.gmra.mxu2 %v2238_v21 }
 0x1fa   :  { %v892_v40 = vpop.f32.mrf.mxu0 }
 0x1fb   :  { %v981_v57 = vpop.f32.mrf.mxu1  ;;  %1381 = vmatmul.bf16.gmra.mxu3 %v1109_v39  ;;  %v2318_v5 = vpack.c.bf16 %v1082_v46, %v1080_v56  ;;  %v893_v33 = vadd.f32 %v892_v40, %v2271_v31 }
 0x1fc   :  { %v749_v54 = vpop.f32.mrf.mxu2 }
 0x1fd   :  { %v750_v6 = vadd.f32 %v749_v54, %v2139_v32  ;;  %v838_v26 = vpop.f32.mrf.mxu3  ;;  %931 = vmatmul.bf16.gmra.mxu0 %v2232_v15  ;;  %v982_v27 = vadd.f32 %v981_v57, %v893_v33 }
 0x1fe   :  { %1020 = vmatmul.bf16.gmra.mxu1 %v2234_v16 }
 0x1ff   :  { %v839_v55 = vadd.f32 %v838_v26, %v750_v6  ;;  %v1057_v36 = vmax.f32 %v982_v27, 0.0 }
 0x201   :  { %v1084_v7 = vmax.f32 %v839_v55, 0.0 }
 0x202   :  { %v894_v51 = vpop.f32.mrf.mxu0 }
 0x203   :  { %v895_v21 = vadd.f32 %v894_v51, %v2271_v31  ;;  %v983_v52 = vpop.f32.mrf.mxu1 }
 0x204   :  { %v751_v60 = vpop.f32.mrf.mxu2 }
 0x205   :  { %v984_v63 = vadd.f32 %v983_v52, %v895_v21  ;;  %v752_v35 = vadd.f32 %v751_v60, %v2139_v32  ;;  %v840_v0 = vpop.f32.mrf.mxu3 }
 0x207   :  { %v1059_v10 = vmax.f32 %v984_v63, 0.0  ;;  %v841_v4 = vadd.f32 %v840_v0, %v752_v35 }
 0x209   :  { %v1111_v15 = vpack.c.bf16 %v1059_v10, %v1057_v36  ;;  %v1086_v2 = vmax.f32 %v841_v4, 0.0  ;;  %1297 = vmatmul.bf16.gmra.mxu2 %v2254_v49 }
 0x20a   :  { %v897_v16 = vpop.f32.mrf.mxu0 }
 0x20b   :  { %v986_v8 = vpop.f32.mrf.mxu1  ;;  %1386 = vmatmul.bf16.gmra.mxu3 %v1111_v15  ;;  %v2327_v9 = vpack.c.bf16 %v1086_v2, %v1084_v7  ;;  %v898_v11 = vadd.f32 %v897_v16, %v2271_v31 }
 0x20c   :  { %v754_v17 = vpop.f32.mrf.mxu2 }
 0x20d   :  { %v755_v18 = vadd.f32 %v754_v17, %v2139_v32  ;;  %v843_v19 = vpop.f32.mrf.mxu3  ;;  %936 = vmatmul.bf16.gmra.mxu0 %v2248_v48  ;;  %v987_v20 = vadd.f32 %v986_v8, %v898_v11 }
 0x20e   :  { %1025 = vmatmul.bf16.gmra.mxu1 %v2250_v53 }
 0x20f   :  { %v844_v1 = vadd.f32 %v843_v19, %v755_v18  ;;  %v1061_v34 = vmax.f32 %v987_v20, 0.0  ;;  %v2355_v20 = vld [vmem:[%s2545_s6] ss:$0 sm:$0xff] }
 0x211   :  { %v1088_v47 = vmax.f32 %v844_v1, 0.0 }
 0x212   :  { %v899_v3 = vpop.f32.mrf.mxu0 }
 0x213   :  { %v900_v49 = vadd.f32 %v899_v3, %v2271_v31  ;;  %v988_v14 = vpop.f32.mrf.mxu1 }
 0x214   :  { %v756_v61 = vpop.f32.mrf.mxu2 }
 0x215   :  { %v989_v62 = vadd.f32 %v988_v14, %v900_v49  ;;  %v757_v28 = vadd.f32 %v756_v61, %v2139_v32  ;;  %v845_v30 = vpop.f32.mrf.mxu3 }
 0x217   :  { %v1063_v37 = vmax.f32 %v989_v62, 0.0  ;;  %v846_v12 = vadd.f32 %v845_v30, %v757_v28 }
 0x219   :  { %v1113_v48 = vpack.c.bf16 %v1063_v37, %v1061_v34  ;;  %v1090_v38 = vmax.f32 %v846_v12, 0.0  ;;  %1302 = vmatmul.bf16.gmra.mxu2 %v2273_v29 }
 0x21a   :  { %v902_v53 = vpop.f32.mrf.mxu0 }
 0x21b   :  { %v991_v13 = vpop.f32.mrf.mxu1  ;;  %1391 = vmatmul.bf16.gmra.mxu3 %v1113_v48  ;;  %v2336_v42 = vpack.c.bf16 %v1090_v38, %v1088_v47  ;;  %v903_v50 = vadd.f32 %v902_v53, %v2271_v31 }
 0x21c   :  { %v759_v43 = vpop.f32.mrf.mxu2 }
 0x21d   :  { %v760_v41 = vadd.f32 %v759_v43, %v2139_v32  ;;  %v848_v44 = vpop.f32.mrf.mxu3  ;;  %941 = vmatmul.bf16.gmra.mxu0 %v2264_v22  ;;  %v992_v39 = vadd.f32 %v991_v13, %v903_v50 }
 0x21e   :  { %1030 = vmatmul.bf16.gmra.mxu1 %v2266_v23 }
 0x21f   :  { %v849_v45 = vadd.f32 %v848_v44, %v760_v41  ;;  %v1065_v26 = vmax.f32 %v992_v39, 0.0 }
 0x221   :  { %v1092_v51 = vmax.f32 %v849_v45, 0.0 }
 0x222   :  { %v904_v56 = vpop.f32.mrf.mxu0 }
 0x223   :  { %v905_v29 = vadd.f32 %v904_v56, %v2271_v31  ;;  %v993_v46 = vpop.f32.mrf.mxu1 }
 0x224   :  { %v761_v40 = vpop.f32.mrf.mxu2 }
 0x225   :  { %v994_v57 = vadd.f32 %v993_v46, %v905_v29  ;;  %v762_v54 = vadd.f32 %v761_v40, %v2139_v32  ;;  %v850_v6 = vpop.f32.mrf.mxu3 }
 0x227   :  { %v1067_v33 = vmax.f32 %v994_v57, 0.0  ;;  %v851_v55 = vadd.f32 %v850_v6, %v762_v54 }
 0x229   :  { %v1115_v22 = vpack.c.bf16 %v1067_v33, %v1065_v26  ;;  %v1094_v27 = vmax.f32 %v851_v55, 0.0  ;;  %1307 = vmatmul.bf16.gmra.mxu2 %v2282_v59 }
 0x22a   :  { %v907_v23 = vpop.f32.mrf.mxu0 }
 0x22b   :  { %v996_v21 = vpop.f32.mrf.mxu1  ;;  %1396 = vmatmul.bf16.gmra.mxu3 %v1115_v22  ;;  %v2345_v52 = vpack.c.bf16 %v1094_v27, %v1092_v51  ;;  %v908_v0 = vadd.f32 %v907_v23, %v2271_v31 }
 0x22c   :  { %v764_v60 = vpop.f32.mrf.mxu2 }
 0x22d   :  { %v765_v63 = vadd.f32 %v764_v60, %v2139_v32  ;;  %v853_v35 = vpop.f32.mrf.mxu3  ;;  %v997_v4 = vadd.f32 %v996_v21, %v908_v0 }
 0x22f   :  { %v854_v36 = vadd.f32 %v853_v35, %v765_v63  ;;  %v1069_v17 = vmax.f32 %v997_v4, 0.0 }
 0x231   :  { %v1096_v11 = vmax.f32 %v854_v36, 0.0 }
 0x232   :  { %v909_v10 = vpop.f32.mrf.mxu0 }
 0x233   :  { %v910_v7 = vadd.f32 %v909_v10, %v2271_v31  ;;  %v998_v15 = vpop.f32.mrf.mxu1 }
 0x234   :  { %v766_v2 = vpop.f32.mrf.mxu2 }
 0x235   :  { %v999_v16 = vadd.f32 %v998_v15, %v910_v7  ;;  %v767_v59 = vadd.f32 %v766_v2, %v2139_v32  ;;  %v855_v8 = vpop.f32.mrf.mxu3 }
 0x237   :  { %v1071_v18 = vmax.f32 %v999_v16, 0.0  ;;  %v856_v19 = vadd.f32 %v855_v8, %v767_v59 }
 0x239   :  { %v1117_v1 = vpack.c.bf16 %v1071_v18, %v1069_v17  ;;  %v1098_v3 = vmax.f32 %v856_v19, 0.0  ;;  %1312 = vmatmul.bf16.gmra.mxu2 %v2291_v25 }
 0x23a   :  { %v912_v49 = vpop.f32.mrf.mxu0 }
 0x23b   :  { %v1001_v14 = vpop.f32.mrf.mxu1  ;;  %1401 = vmatmul.bf16.gmra.mxu3 %v1117_v1  ;;  %v2357_v61 = vpack.c.bf16 %v1098_v3, %v1096_v11  ;;  %v913_v30 = vadd.f32 %v912_v49, %v2271_v31 }
 0x23c   :  { %v1273_v32 = vpop.f32.mrf.mxu2 }
 0x23d   :  { %v1274_v62 = vadd.f32 %v2355_v20, %v1273_v32  ;;  %v1002_v37 = vadd.f32 %v1001_v14, %v913_v30 }
 0x23e   :  { %v1362_v28 = vpop.f32.mrf.mxu3 }
 0x23f   :  { %v1363_v34 = vadd.f32 %v1362_v28, %v1274_v62  ;;  %v1073_v43 = vmax.f32 %v1002_v37, 0.0 }
 0x241   :  { %1443 = vst.msk [vmem:[%s2546_s7] sm:$0xff] %vm1442_vm0, %v1363_v34 }
 0x242   :  { %v914_v25 = vpop.f32.mrf.mxu0 }
 0x243   :  { %v915_v12 = vadd.f32 %v914_v25, %v2271_v31  ;;  %v1003_v47 = vpop.f32.mrf.mxu1 }
 0x244   :  { %v1275_v48 = vpop.f32.mrf.mxu2 }
 0x245   :  { %v1004_v38 = vadd.f32 %v1003_v47, %v915_v12  ;;  %v1276_v53 = vadd.f32 %v2355_v20, %v1275_v48 }
 0x246   :  { %v1364_v13 = vpop.f32.mrf.mxu3 }
 0x247   :  { %v1075_v41 = vmax.f32 %v1004_v38, 0.0  ;;  %v1365_v44 = vadd.f32 %v1364_v13, %v1276_v53 }
 0x249   :  { %v1119_v50 = vpack.c.bf16 %v1075_v41, %v1073_v43  ;;  %1444 = vst.msk [vmem:[%s2546_s7 + $0x8] sm:$0xff] %vm1442_vm0, %v1365_v44  ;;  %1317 = vmatmul.bf16.gmra.mxu2 %v2300_v58 }
 0x24a   :  { %v917_v45 = vpop.f32.mrf.mxu0 }
 0x24b   :  { %v1006_v56 = vpop.f32.mrf.mxu1  ;;  %1406 = vmatmul.bf16.gmra.mxu3 %v1119_v50  ;;  %v918_v40 = vadd.f32 %v917_v45, %v2271_v31 }
 0x24c   :  { %v1278_v39 = vpop.f32.mrf.mxu2 }
 0x24d   :  { %v1279_v29 = vadd.f32 %v2355_v20, %v1278_v39  ;;  %v1007_v6 = vadd.f32 %v1006_v56, %v918_v40 }
 0x24e   :  { %v1367_v46 = vpop.f32.mrf.mxu3 }
 0x24f   :  { %v1368_v57 = vadd.f32 %v1367_v46, %v1279_v29  ;;  %v1077_v27 = vmax.f32 %v1007_v6, 0.0 }
 0x251   :  { %1445 = vst.msk [vmem:[%s2546_s7 + $0x10] sm:$0xff] %vm1442_vm0, %v1368_v57 }
 0x252   :  { %v919_v54 = vpop.f32.mrf.mxu0 }
 0x253   :  { %v920_v26 = vadd.f32 %v919_v54, %v2271_v31  ;;  %v1008_v58 = vpop.f32.mrf.mxu1 }
 0x254   :  { %v1280_v33 = vpop.f32.mrf.mxu2 }
 0x255   :  { %v1009_v55 = vadd.f32 %v1008_v58, %v920_v26  ;;  %v1281_v51 = vadd.f32 %v2355_v20, %v1280_v33 }
 0x256   :  { %v1369_v22 = vpop.f32.mrf.mxu3 }
 0x257   :  { %v1079_v23 = vmax.f32 %v1009_v55, 0.0  ;;  %v1370_v21 = vadd.f32 %v1369_v22, %v1281_v51 }
 0x259   :  { %v1121_v60 = vpack.c.bf16 %v1079_v23, %v1077_v27  ;;  %1446 = vst.msk [vmem:[%s2546_s7 + $0x18] sm:$0xff] %vm1442_vm0, %v1370_v21  ;;  %1322 = vmatmul.bf16.gmra.mxu2 %v2309_v24 }
 0x25a   :  { %v922_v63 = vpop.f32.mrf.mxu0 }
 0x25b   :  { %v1011_v35 = vpop.f32.mrf.mxu1  ;;  %1411 = vmatmul.bf16.gmra.mxu3 %v1121_v60  ;;  %v923_v4 = vadd.f32 %v922_v63, %v2271_v31 }
 0x25c   :  { %v1283_v0 = vpop.f32.mrf.mxu2 }
 0x25d   :  { %v1284_v36 = vadd.f32 %v2355_v20, %v1283_v0  ;;  %v1012_v2 = vadd.f32 %v1011_v35, %v923_v4 }
 0x25e   :  { %v1372_v10 = vpop.f32.mrf.mxu3 }
 0x25f   :  { %v1373_v7 = vadd.f32 %v1372_v10, %v1284_v36  ;;  %v1081_v19 = vmax.f32 %v1012_v2, 0.0 }
 0x261   :  { %1447 = vst.msk [vmem:[%s2546_s7 + $0x20] sm:$0xff] %vm1442_vm0, %v1373_v7 }
 0x262   :  { %v924_v15 = vpop.f32.mrf.mxu0 }
 0x263   :  { %v925_v16 = vadd.f32 %v924_v15, %v2271_v31  ;;  %v1013_v24 = vpop.f32.mrf.mxu1 }
 0x264   :  { %v1285_v59 = vpop.f32.mrf.mxu2 }
 0x265   :  { %v1014_v8 = vadd.f32 %v1013_v24, %v925_v16  ;;  %v1286_v17 = vadd.f32 %v2355_v20, %v1285_v59 }
 0x266   :  { %v1374_v18 = vpop.f32.mrf.mxu3 }
 0x267   :  { %v1083_v11 = vmax.f32 %v1014_v8, 0.0  ;;  %v1375_v1 = vadd.f32 %v1374_v18, %v1286_v17 }
 0x269   :  { %v1123_v3 = vpack.c.bf16 %v1083_v11, %v1081_v19  ;;  %1448 = vst.msk [vmem:[%s2546_s7 + $0x28] sm:$0xff] %vm1442_vm0, %v1375_v1  ;;  %1327 = vmatmul.bf16.gmra.mxu2 %v2318_v5 }
 0x26a   :  { %v927_v49 = vpop.f32.mrf.mxu0 }
 0x26b   :  { %v1016_v14 = vpop.f32.mrf.mxu1  ;;  %1416 = vmatmul.bf16.gmra.mxu3 %v1123_v3  ;;  %v928_v30 = vadd.f32 %v927_v49, %v2271_v31 }
 0x26c   :  { %v1288_v32 = vpop.f32.mrf.mxu2 }
 0x26d   :  { %v1289_v62 = vadd.f32 %v2355_v20, %v1288_v32  ;;  %v1017_v37 = vadd.f32 %v1016_v14, %v928_v30 }
 0x26e   :  { %v1377_v28 = vpop.f32.mrf.mxu3 }
 0x26f   :  { %v1378_v34 = vadd.f32 %v1377_v28, %v1289_v62  ;;  %v1085_v13 = vmax.f32 %v1017_v37, 0.0 }
 0x271   :  { %1449 = vst.msk [vmem:[%s2546_s7 + $0x30] sm:$0xff] %vm1442_vm0, %v1378_v34 }
 0x272   :  { %v929_v25 = vpop.f32.mrf.mxu0 }
 0x273   :  { %v930_v12 = vadd.f32 %v929_v25, %v2271_v31  ;;  %v1018_v5 = vpop.f32.mrf.mxu1 }
 0x274   :  { %v1290_v47 = vpop.f32.mrf.mxu2 }
 0x275   :  { %v1019_v48 = vadd.f32 %v1018_v5, %v930_v12  ;;  %v1291_v38 = vadd.f32 %v2355_v20, %v1290_v47 }
 0x276   :  { %v1379_v53 = vpop.f32.mrf.mxu3 }
 0x277   :  { %v1087_v43 = vmax.f32 %v1019_v48, 0.0  ;;  %v1380_v41 = vadd.f32 %v1379_v53, %v1291_v38 }
 0x279   :  { %v1125_v44 = vpack.c.bf16 %v1087_v43, %v1085_v13  ;;  %1450 = vst.msk [vmem:[%s2546_s7 + $0x38] sm:$0xff] %vm1442_vm0, %v1380_v41  ;;  %1332 = vmatmul.bf16.gmra.mxu2 %v2327_v9 }
 0x27a   :  { %v932_v50 = vpop.f32.mrf.mxu0 }
 0x27b   :  { %v1021_v45 = vpop.f32.mrf.mxu1  ;;  %1421 = vmatmul.bf16.gmra.mxu3 %v1125_v44  ;;  %v933_v46 = vadd.f32 %v932_v50, %v2271_v31 }
 0x27c   :  { %v1293_v56 = vpop.f32.mrf.mxu2 }
 0x27d   :  { %v1294_v39 = vadd.f32 %v2355_v20, %v1293_v56  ;;  %v1022_v54 = vadd.f32 %v1021_v45, %v933_v46 }
 0x27e   :  { %v1382_v29 = vpop.f32.mrf.mxu3 }
 0x27f   :  { %v1383_v40 = vadd.f32 %v1382_v29, %v1294_v39  ;;  %v1089_v51 = vmax.f32 %v1022_v54, 0.0 }
 0x281   :  { %1451 = vst.msk [vmem:[%s2546_s7 + $0x40] sm:$0xff] %vm1442_vm0, %v1383_v40 }
 0x282   :  { %v934_v57 = vpop.f32.mrf.mxu0 }
 0x283   :  { %v935_v6 = vadd.f32 %v934_v57, %v2271_v31  ;;  %v1023_v9 = vpop.f32.mrf.mxu1 }
 0x284   :  { %v1295_v26 = vpop.f32.mrf.mxu2 }
 0x285   :  { %v1024_v58 = vadd.f32 %v1023_v9, %v935_v6  ;;  %v1296_v33 = vadd.f32 %v2355_v20, %v1295_v26 }
 0x286   :  { %v1384_v55 = vpop.f32.mrf.mxu3 }
 0x287   :  { %v1091_v22 = vmax.f32 %v1024_v58, 0.0  ;;  %v1385_v27 = vadd.f32 %v1384_v55, %v1296_v33 }
 0x289   :  { %v1127_v23 = vpack.c.bf16 %v1091_v22, %v1089_v51  ;;  %1452 = vst.msk [vmem:[%s2546_s7 + $0x48] sm:$0xff] %vm1442_vm0, %v1385_v27  ;;  %1337 = vmatmul.bf16.gmra.mxu2 %v2336_v42 }
 0x28a   :  { %v937_v21 = vpop.f32.mrf.mxu0 }
 0x28b   :  { %v1026_v60 = vpop.f32.mrf.mxu1  ;;  %1426 = vmatmul.bf16.gmra.mxu3 %v1127_v23  ;;  %v938_v36 = vadd.f32 %v937_v21, %v2271_v31 }
 0x28c   :  { %v1298_v63 = vpop.f32.mrf.mxu2 }
 0x28d   :  { %v1299_v35 = vadd.f32 %v2355_v20, %v1298_v63  ;;  %v1027_v7 = vadd.f32 %v1026_v60, %v938_v36 }
 0x28e   :  { %v1387_v0 = vpop.f32.mrf.mxu3 }
 0x28f   :  { %v1388_v10 = vadd.f32 %v1387_v0, %v1299_v35  ;;  %v1093_v8 = vmax.f32 %v1027_v7, 0.0 }
 0x291   :  { %1453 = vst.msk [vmem:[%s2546_s7 + $0x50] sm:$0xff] %vm1442_vm0, %v1388_v10 }
 0x292   :  { %v939_v4 = vpop.f32.mrf.mxu0 }
 0x293   :  { %v940_v15 = vadd.f32 %v939_v4, %v2271_v31  ;;  %v1028_v42 = vpop.f32.mrf.mxu1 }
 0x294   :  { %v1300_v2 = vpop.f32.mrf.mxu2 }
 0x295   :  { %v1029_v16 = vadd.f32 %v1028_v42, %v940_v15  ;;  %v1301_v24 = vadd.f32 %v2355_v20, %v1300_v2 }
 0x296   :  { %v1389_v59 = vpop.f32.mrf.mxu3 }
 0x297   :  { %v1095_v17 = vmax.f32 %v1029_v16, 0.0  ;;  %v1390_v18 = vadd.f32 %v1389_v59, %v1301_v24 }
 0x299   :  { %v1129_v19 = vpack.c.bf16 %v1095_v17, %v1093_v8  ;;  %1454 = vst.msk [vmem:[%s2546_s7 + $0x58] sm:$0xff] %vm1442_vm0, %v1390_v18  ;;  %1342 = vmatmul.bf16.gmra.mxu2 %v2345_v52 }
 0x29a   :  { %v942_v11 = vpop.f32.mrf.mxu0 }
 0x29b   :  { %v1031_v1 = vpop.f32.mrf.mxu1  ;;  %1431 = vmatmul.bf16.gmra.mxu3 %v1129_v19  ;;  %v943_v32 = vadd.f32 %v942_v11, %v2271_v31 }
 0x29c   :  { %v1303_v3 = vpop.f32.mrf.mxu2 }
 0x29d   :  { %v1304_v49 = vadd.f32 %v2355_v20, %v1303_v3  ;;  %v1032_v30 = vadd.f32 %v1031_v1, %v943_v32 }
 0x29e   :  { %v1392_v14 = vpop.f32.mrf.mxu3 }
 0x29f   :  { %v1393_v62 = vadd.f32 %v1392_v14, %v1304_v49  ;;  %v1097_v47 = vmax.f32 %v1032_v30, 0.0 }
 0x2a1   :  { %1455 = vst.msk [vmem:[%s2546_s7 + $0x60] sm:$0xff] %vm1442_vm0, %v1393_v62 }
 0x2a2   :  { %v944_v28 = vpop.f32.mrf.mxu0 }
 0x2a3   :  { %v945_v34 = vadd.f32 %v944_v28, %v2271_v31  ;;  %v1033_v52 = vpop.f32.mrf.mxu1 }
 0x2a4   :  { %v1305_v25 = vpop.f32.mrf.mxu2 }
 0x2a5   :  { %v1034_v37 = vadd.f32 %v1033_v52, %v945_v34  ;;  %v1306_v12 = vadd.f32 %v2355_v20, %v1305_v25 }
 0x2a6   :  { %v1394_v5 = vpop.f32.mrf.mxu3 }
 0x2a7   :  { %v1099_v48 = vmax.f32 %v1034_v37, 0.0  ;;  %v1395_v38 = vadd.f32 %v1394_v5, %v1306_v12 }
 0x2a9   :  { %v1131_v53 = vpack.c.bf16 %v1099_v48, %v1097_v47  ;;  %1456 = vst.msk [vmem:[%s2546_s7 + $0x68] sm:$0xff] %vm1442_vm0, %v1395_v38  ;;  %1347 = vmatmul.bf16.gmra.mxu2 %v2357_v61 }
 0x2ab   :  { %1436 = vmatmul.bf16.gmra.mxu3 %v1131_v53 }
 0x2ac   :  { %v1308_v13 = vpop.f32.mrf.mxu2 }
 0x2ad   :  { %v1309_v31 = vadd.f32 %v2355_v20, %v1308_v13 }
 0x2ae   :  { %v1397_v43 = vpop.f32.mrf.mxu3 }
 0x2af   :  { %v1398_v41 = vadd.f32 %v1397_v43, %v1309_v31 }
 0x2b1   :  { %1457 = vst.msk [vmem:[%s2546_s7 + $0x70] sm:$0xff] %vm1442_vm0, %v1398_v41 }
 0x2b4   :  { %v1310_v44 = vpop.f32.mrf.mxu2 }
 0x2b5   :  { %v1311_v50 = vadd.f32 %v2355_v20, %v1310_v44 }
 0x2b6   :  { %v1399_v45 = vpop.f32.mrf.mxu3 }
 0x2b7   :  { %v1400_v56 = vadd.f32 %v1399_v45, %v1311_v50 }
 0x2b9   :  { %1458 = vst.msk [vmem:[%s2546_s7 + $0x78] sm:$0xff] %vm1442_vm0, %v1400_v56 }
 0x2bc   :  { %v1313_v61 = vpop.f32.mrf.mxu2 }
 0x2bd   :  { %v1314_v39 = vadd.f32 %v2355_v20, %v1313_v61 }
 0x2be   :  { %v1402_v29 = vpop.f32.mrf.mxu3 }
 0x2bf   :  { %v1403_v46 = vadd.f32 %v1402_v29, %v1314_v39 }
 0x2c1   :  { %1459 = vst.msk [vmem:[%s2546_s7 + $0x80] sm:$0xff] %vm1442_vm0, %v1403_v46 }
 0x2c4   :  { %v1315_v40 = vpop.f32.mrf.mxu2 }
 0x2c5   :  { %v1316_v57 = vadd.f32 %v2355_v20, %v1315_v40 }
 0x2c6   :  { %v1404_v54 = vpop.f32.mrf.mxu3 }
 0x2c7   :  { %v1405_v6 = vadd.f32 %v1404_v54, %v1316_v57 }
 0x2c9   :  { %1460 = vst.msk [vmem:[%s2546_s7 + $0x88] sm:$0xff] %vm1442_vm0, %v1405_v6 }
 0x2cc   :  { %v1318_v9 = vpop.f32.mrf.mxu2 }
 0x2cd   :  { %v1319_v26 = vadd.f32 %v2355_v20, %v1318_v9 }
 0x2ce   :  { %v1407_v58 = vpop.f32.mrf.mxu3 }
 0x2cf   :  { %v1408_v33 = vadd.f32 %v1407_v58, %v1319_v26 }
 0x2d1   :  { %1461 = vst.msk [vmem:[%s2546_s7 + $0x90] sm:$0xff] %vm1442_vm0, %v1408_v33 }
 0x2d4   :  { %v1320_v55 = vpop.f32.mrf.mxu2 }
 0x2d5   :  { %v1321_v51 = vadd.f32 %v2355_v20, %v1320_v55 }
 0x2d6   :  { %v1409_v22 = vpop.f32.mrf.mxu3 }
 0x2d7   :  { %v1410_v27 = vadd.f32 %v1409_v22, %v1321_v51 }
 0x2d9   :  { %1462 = vst.msk [vmem:[%s2546_s7 + $0x98] sm:$0xff] %vm1442_vm0, %v1410_v27 }
 0x2dc   :  { %v1323_v23 = vpop.f32.mrf.mxu2 }
 0x2dd   :  { %v1324_v21 = vadd.f32 %v2355_v20, %v1323_v23 }
 0x2de   :  { %v1412_v60 = vpop.f32.mrf.mxu3 }
 0x2df   :  { %v1413_v63 = vadd.f32 %v1412_v60, %v1324_v21 }
 0x2e1   :  { %1463 = vst.msk [vmem:[%s2546_s7 + $0xa0] sm:$0xff] %vm1442_vm0, %v1413_v63 }
 0x2e4   :  { %v1325_v35 = vpop.f32.mrf.mxu2 }
 0x2e5   :  { %v1326_v0 = vadd.f32 %v2355_v20, %v1325_v35 }
 0x2e6   :  { %v1414_v36 = vpop.f32.mrf.mxu3 }
 0x2e7   :  { %v1415_v10 = vadd.f32 %v1414_v36, %v1326_v0 }
 0x2e9   :  { %1464 = vst.msk [vmem:[%s2546_s7 + $0xa8] sm:$0xff] %vm1442_vm0, %v1415_v10 }
 0x2ec   :  { %v1328_v4 = vpop.f32.mrf.mxu2 }
 0x2ed   :  { %v1329_v7 = vadd.f32 %v2355_v20, %v1328_v4 }
 0x2ee   :  { %v1417_v15 = vpop.f32.mrf.mxu3 }
 0x2ef   :  { %v1418_v42 = vadd.f32 %v1417_v15, %v1329_v7 }
 0x2f1   :  { %1465 = vst.msk [vmem:[%s2546_s7 + $0xb0] sm:$0xff] %vm1442_vm0, %v1418_v42 }
 0x2f4   :  { %v1330_v2 = vpop.f32.mrf.mxu2 }
 0x2f5   :  { %v1331_v16 = vadd.f32 %v2355_v20, %v1330_v2 }
 0x2f6   :  { %v1419_v24 = vpop.f32.mrf.mxu3 }
 0x2f7   :  { %v1420_v59 = vadd.f32 %v1419_v24, %v1331_v16 }
 0x2f9   :  { %1466 = vst.msk [vmem:[%s2546_s7 + $0xb8] sm:$0xff] %vm1442_vm0, %v1420_v59 }
 0x2fc   :  { %v1333_v8 = vpop.f32.mrf.mxu2 }
 0x2fd   :  { %v1334_v17 = vadd.f32 %v2355_v20, %v1333_v8 }
 0x2fe   :  { %v1422_v18 = vpop.f32.mrf.mxu3 }
 0x2ff   :  { %v1423_v19 = vadd.f32 %v1422_v18, %v1334_v17 }
 0x301   :  { %1467 = vst.msk [vmem:[%s2546_s7 + $0xc0] sm:$0xff] %vm1442_vm0, %v1423_v19 }
 0x304   :  { %v1335_v11 = vpop.f32.mrf.mxu2 }
 0x305   :  { %v1336_v1 = vadd.f32 %v2355_v20, %v1335_v11 }
 0x306   :  { %v1424_v3 = vpop.f32.mrf.mxu3 }
 0x307   :  { %v1425_v49 = vadd.f32 %v1424_v3, %v1336_v1 }
 0x309   :  { %1468 = vst.msk [vmem:[%s2546_s7 + $0xc8] sm:$0xff] %vm1442_vm0, %v1425_v49 }
 0x30c   :  { %v1338_v14 = vpop.f32.mrf.mxu2 }
 0x30d   :  { %v1339_v32 = vadd.f32 %v2355_v20, %v1338_v14 }
 0x30e   :  { %v1427_v62 = vpop.f32.mrf.mxu3 }
 0x30f   :  { %v1428_v28 = vadd.f32 %v1427_v62, %v1339_v32 }
 0x311   :  { %1469 = vst.msk [vmem:[%s2546_s7 + $0xd0] sm:$0xff] %vm1442_vm0, %v1428_v28 }
 0x314   :  { %v1340_v30 = vpop.f32.mrf.mxu2 }
 0x315   :  { %v1341_v34 = vadd.f32 %v2355_v20, %v1340_v30 }
 0x316   :  { %v1429_v52 = vpop.f32.mrf.mxu3 }
 0x317   :  { %v1430_v25 = vadd.f32 %v1429_v52, %v1341_v34 }
 0x319   :  { %1470 = vst.msk [vmem:[%s2546_s7 + $0xd8] sm:$0xff] %vm1442_vm0, %v1430_v25 }
 0x31c   :  { %v1343_v37 = vpop.f32.mrf.mxu2 }
 0x31d   :  { %v1344_v12 = vadd.f32 %v2355_v20, %v1343_v37 }
 0x31e   :  { %v1432_v5 = vpop.f32.mrf.mxu3 }
 0x31f   :  { %v1433_v47 = vadd.f32 %v1432_v5, %v1344_v12 }
 0x321   :  { %1471 = vst.msk [vmem:[%s2546_s7 + $0xe0] sm:$0xff] %vm1442_vm0, %v1433_v47 }
 0x324   :  { %v1345_v48 = vpop.f32.mrf.mxu2 }
 0x325   :  { %v1346_v38 = vadd.f32 %v2355_v20, %v1345_v48 }
 0x326   :  { %v1434_v53 = vpop.f32.mrf.mxu3 }
 0x327   :  { %v1435_v13 = vadd.f32 %v1434_v53, %v1346_v38 }
 0x329   :  { %1472 = vst.msk [vmem:[%s2546_s7 + $0xe8] sm:$0xff] %vm1442_vm0, %v1435_v13 }
 0x32c   :  { %v1348_v31 = vpop.f32.mrf.mxu2 }
 0x32d   :  { %v1349_v43 = vadd.f32 %v2355_v20, %v1348_v31 }
 0x32e   :  { %v1437_v41 = vpop.f32.mrf.mxu3 }
 0x32f   :  { %v1438_v44 = vadd.f32 %v1437_v41, %v1349_v43 }
 0x331   :  { %1473 = vst.msk [vmem:[%s2546_s7 + $0xf0] sm:$0xff] %vm1442_vm0, %v1438_v44 }
 0x334   :  { %v1350_v50 = vpop.f32.mrf.mxu2 }
 0x335   :  { %v1351_v45 = vadd.f32 %v2355_v20, %v1350_v50 }
 0x336   :  { %v1439_v56 = vpop.f32.mrf.mxu3 }
 0x337   :  { %v1440_v61 = vadd.f32 %v1439_v56, %v1351_v45 }
 0x339   :  { %1475 = vst.msk [vmem:[%s2546_s7 + $0xf8] sm:$0x3] %vm1474_vm1, %v1440_v61 }
 0x33a   :  { %1480 = vsyncpa [#allocation3], 1 }
 0x33b   :  { %1481 = vsyncpa [#allocation5], 1 }

</bundles_post_ra>
